<compile_context>
chip_gen: v7x
topology: tpu7x:2x2x1
jax: 0.10.0
libtpu: 0.0.40
codegen_flags: <defaults>
</compile_context>

<pallas_src>
import functools

import jax
import jax.numpy as jnp
from jax import lax
from jax.experimental import pallas as pl
from jax.experimental.pallas import tpu as pltpu

LN_EPS = 1e-5
NEG_INF = -1e9
VMEM_LIMIT = 64 * 1024 * 1024  # safe on v5e/v6e (128 MiB phys) and v7x (64 MiB)


def _layernorm(x, w, b):
    # x: (..., D); w, b: (1, D).  Always computed in float32.
    x = x.astype(jnp.float32)
    mu = jnp.mean(x, axis=-1, keepdims=True)
    var = jnp.mean((x - mu) ** 2, axis=-1, keepdims=True)
    return (x - mu) * lax.rsqrt(var + LN_EPS) * w + b


# ----------------------------------------------------------------------------
# Kernels
# ----------------------------------------------------------------------------
def attn_block_kernel(x_ref, mask_ref, ln1w, ln1b, wqkv, bqkv, wo, bo,
                      o_ref, a_scr, *, n_head):
    # One attention half-block for one batch element: x + MHA(LN1(x)).
    # x_ref block: (1, Lp, D) f32.  wqkv: (D, 3D) bf16 (pre-fused, pre-transposed).
    x = x_ref[0]                                    # (Lp, D) f32
    Lp, D = x.shape
    hd = D // n_head
    scale = 1.0 / jnp.sqrt(jnp.float32(hd))

    y = _layernorm(x, ln1w[...], ln1b[...]).astype(jnp.bfloat16)
    qkv = jnp.dot(y, wqkv[...], preferred_element_type=jnp.float32) + bqkv[...]  # (Lp, 3D)

    mask = mask_ref[...]                            # (1, Lp) additive key-pad mask
    for h in range(n_head):                         # static unroll over heads
        lo = h * hd
        qh = (qkv[:, lo:lo + hd] * scale).astype(jnp.bfloat16)
        kh = qkv[:, D + lo:D + lo + hd].astype(jnp.bfloat16)
        vh = qkv[:, 2 * D + lo:2 * D + lo + hd].astype(jnp.bfloat16)
        s = lax.dot_general(qh, kh, (((1,), (1,)), ((), ())),
                            preferred_element_type=jnp.float32) + mask     # (Lp, Lp)
        s = s - jnp.max(s, axis=-1, keepdims=True)
        p = jnp.exp(s)
        p = p * pl.reciprocal(jnp.sum(p, axis=-1, keepdims=True), approx=True)
        # write this head's output into its lane slice of the VMEM scratch
        a_scr[:, lo:lo + hd] = jnp.dot(
            p.astype(jnp.bfloat16), vh,
            preferred_element_type=jnp.float32).astype(jnp.bfloat16)

    attn_out = jnp.dot(a_scr[...], wo[...], preferred_element_type=jnp.float32) + bo[...]
    o_ref[0] = x + attn_out


def mlp_block_kernel(x_ref, ln2w, ln2b, wfc, bfc, wpr, bpr,
                     o_ref, y_scr, acc_scr):
    # One MLP half-block for one batch element: x + c_proj(QuickGELU(c_fc(LN2(x)))).
    # The 4*D hidden dimension is streamed over grid axis 1 ("arbitrary"):
    # wfc block (D, th), wpr block (th, D), accumulate c_proj partial sums.
    h = pl.program_id(1)

    @pl.when(h == 0)
    def _():
        y_scr[...] = _layernorm(x_ref[0], ln2w[...], ln2b[...]).astype(jnp.bfloat16)
        acc_scr[...] = jnp.zeros_like(acc_scr)

    hid = jnp.dot(y_scr[...], wfc[...], preferred_element_type=jnp.float32) + bfc[...]
    hid = hid * jax.nn.sigmoid(1.702 * hid)         # QuickGELU (f32)
    acc_scr[...] += jnp.dot(hid.astype(jnp.bfloat16), wpr[...],
                            preferred_element_type=jnp.float32)

    @pl.when(h == pl.num_programs(1) - 1)
    def _():
        o_ref[0] = x_ref[0] + acc_scr[...] + bpr[...]


# ----------------------------------------------------------------------------
# pallas_call wrappers
# ----------------------------------------------------------------------------
def _const_spec(shape):
    nd = len(shape)
    return pl.BlockSpec(shape, lambda *_: (0,) * nd)


def attn_call(x, mask, p, n_head):
    B, Lp, D = x.shape
    kernel = functools.partial(attn_block_kernel, n_head=n_head)
    return pl.pallas_call(
        kernel,
        grid=(B,),
        in_specs=[
            pl.BlockSpec((1, Lp, D), lambda b: (b, 0, 0)),
            _const_spec((1, Lp)),                               # key-pad mask
            _const_spec((1, D)), _const_spec((1, D)),           # ln_1
            _const_spec((D, 3 * D)), _const_spec((1, 3 * D)),   # fused qkv
            _const_spec((D, D)), _const_spec((1, D)),           # out_proj
        ],
        out_specs=pl.BlockSpec((1, Lp, D), lambda b: (b, 0, 0)),
        out_shape=jax.ShapeDtypeStruct((B, Lp, D), jnp.float32),
        scratch_shapes=[pltpu.VMEM((Lp, D), jnp.bfloat16)],
        compiler_params=pltpu.CompilerParams(
            dimension_semantics=("parallel",),
            vmem_limit_bytes=VMEM_LIMIT),
    )(x, mask, p['ln1_w'], p['ln1_b'], p['w_qkv'], p['b_qkv'], p['w_o'], p['b_o'])


def _pick_hidden_tile(hidden):
    # largest "nice" lane-aligned tile that divides the MLP hidden dim
    for cand in (512, 256, 128):
        if hidden > cand and hidden % cand == 0:
            return cand
    return hidden


def mlp_call(x, p):
    B, Lp, D = x.shape
    hidden = p['w_fc'].shape[1]                     # 4 * D
    th = _pick_hidden_tile(hidden)
    nh = hidden // th
    return pl.pallas_call(
        mlp_block_kernel,
        grid=(B, nh),
        in_specs=[
            pl.BlockSpec((1, Lp, D), lambda b, h: (b, 0, 0)),
            _const_spec((1, D)), _const_spec((1, D)),            # ln_2
            pl.BlockSpec((D, th), lambda b, h: (0, h)),          # c_fc weight tile
            pl.BlockSpec((1, th), lambda b, h: (0, h)),          # c_fc bias tile
            pl.BlockSpec((th, D), lambda b, h: (h, 0)),          # c_proj weight tile
            _const_spec((1, D)),                                 # c_proj bias
        ],
        out_specs=pl.BlockSpec((1, Lp, D), lambda b, h: (b, 0, 0)),
        out_shape=jax.ShapeDtypeStruct((B, Lp, D), jnp.float32),
        scratch_shapes=[pltpu.VMEM((Lp, D), jnp.bfloat16),       # LN2(x) in bf16
                        pltpu.VMEM((Lp, D), jnp.float32)],       # c_proj accumulator
        compiler_params=pltpu.CompilerParams(
            dimension_semantics=("parallel", "arbitrary"),
            vmem_limit_bytes=VMEM_LIMIT),
    )(x, p['ln2_w'], p['ln2_b'], p['w_fc'], p['b_fc'], p['w_pr'], p['b_pr'])


# ----------------------------------------------------------------------------
# Parameter init (deterministic, synthetic — shapes match the PyTorch module,
# but weights are stored pre-fused / pre-transposed / bf16 for the kernels).
# ----------------------------------------------------------------------------
def init_params(key, *, width, layers):
    D = width

    def nrm(k, shape, s=0.02):
        return s * jax.random.normal(k, shape, dtype=jnp.float32)

    keys = iter(jax.random.split(key, 12 * layers + 1))
    layer_params = []
    for _ in range(layers):
        wq = nrm(next(keys), (D, D)); wk = nrm(next(keys), (D, D)); wv = nrm(next(keys), (D, D))
        bq = nrm(next(keys), (D,));   bk = nrm(next(keys), (D,));   bv = nrm(next(keys), (D,))
        wo = nrm(next(keys), (D, D)); bo = nrm(next(keys), (D,))
        wfc = nrm(next(keys), (4 * D, D)); bfc = nrm(next(keys), (4 * D,))
        wpr = nrm(next(keys), (D, 4 * D)); bpr = nrm(next(keys), (D,))
        layer_params.append({
            'ln1_w': jnp.ones((1, D), jnp.float32),
            'ln1_b': jnp.zeros((1, D), jnp.float32),
            # y @ concat([Wq,Wk,Wv], 0).T  ==  y @ w_qkv  with w_qkv : (D, 3D)
            'w_qkv': jnp.concatenate([wq, wk, wv], axis=0).T.astype(jnp.bfloat16),
            'b_qkv': jnp.concatenate([bq, bk, bv]).reshape(1, 3 * D),
            'w_o': wo.T.astype(jnp.bfloat16),                    # (D, D), pre-transposed
            'b_o': bo.reshape(1, D),
            'ln2_w': jnp.ones((1, D), jnp.float32),
            'ln2_b': jnp.zeros((1, D), jnp.float32),
            'w_fc': wfc.T.astype(jnp.bfloat16),                  # (D, 4D), pre-transposed
            'b_fc': bfc.reshape(1, 4 * D),
            'w_pr': wpr.T.astype(jnp.bfloat16),                  # (4D, D), pre-transposed
            'b_pr': bpr.reshape(1, D),
        })
    return {'layers': layer_params}


# ----------------------------------------------------------------------------
# Full forward: Transformer.forward(x, dense=False, prompt=None), prompt_length=0.
# x follows the PyTorch layout (L, N, D); returns (L, N, D).
# ----------------------------------------------------------------------------
def transformer_forward(x_lnd, params, *, heads):
    L, N, D = x_lnd.shape
    x = jnp.transpose(x_lnd, (1, 0, 2)).astype(jnp.float32)     # (B, L, D) batch-major
    Lp = -(-L // 8) * 8                                          # pad seq to sublane multiple
    if Lp != L:
        x = jnp.pad(x, ((0, 0), (0, Lp - L), (0, 0)))
    # additive key mask: 0 for real tokens, -1e9 for pad keys
    mask = jnp.where(jnp.arange(Lp) < L, 0.0, NEG_INF).astype(jnp.float32).reshape(1, Lp)

    for lp in params['layers']:
        x = attn_call(x, mask, lp, heads)
        x = mlp_call(x, lp)

    return jnp.transpose(x[:, :L, :], (1, 0, 2))                 # back to (L, N, D)


if __name__ == "__main__":
    # Small configuration consistent with the module.
    width = 128
    heads = 4
    layers = 2
    seq_len = 10      # not a multiple of 8 -> exercises padding + key mask
    batch = 2

    key = jax.random.PRNGKey(0)
    k_x, k_p = jax.random.split(key)
    x = jax.random.normal(k_x, (seq_len, batch, width), dtype=jnp.float32)  # (L, N, D)
    params = init_params(k_p, width=width, layers=layers)

    out = transformer_forward(x, params, heads=heads)
    out = jax.block_until_ready(out)
    assert out.shape == (seq_len, batch, width), out.shape
    assert bool(jnp.all(jnp.isfinite(out)))
    print("KERNEL_OK")
</pallas_src>

<mosaic_0001>
module attributes {stable_mosaic.version = 11 : i64} {
  func.func @attn_block_kernel(%arg0: i32, %arg1: memref<1x16x128xf32, #tpu.memory_space<vmem>>, %arg2: memref<1x16xf32, #tpu.memory_space<vmem>>, %arg3: memref<1x128xf32, #tpu.memory_space<vmem>>, %arg4: memref<1x128xf32, #tpu.memory_space<vmem>>, %arg5: memref<128x384xbf16, #tpu.memory_space<vmem>>, %arg6: memref<1x384xf32, #tpu.memory_space<vmem>>, %arg7: memref<128x128xbf16, #tpu.memory_space<vmem>>, %arg8: memref<1x128xf32, #tpu.memory_space<vmem>>, %arg9: memref<1x16x128xf32, #tpu.memory_space<vmem>>, %arg10: memref<16x128xbf16, #tpu.memory_space<vmem>>) attributes {dimension_semantics = [#tpu.dimension_semantics<parallel>], iteration_bounds = array<i64: 2>, scalar_prefetch = 0 : i64, scratch_operands = 1 : i64, tpu.core_type = #tpu.core_type<tc>, window_params = [{transform_indices = @transform_0, window_bounds = array<i64: 1, 16, 128>}, {pipeline_mode = #tpu.pipeline_mode<synchronous>, transform_indices = @transform_1, window_bounds = array<i64: 1, 16>}, {pipeline_mode = #tpu.pipeline_mode<synchronous>, transform_indices = @transform_2, window_bounds = array<i64: 1, 128>}, {pipeline_mode = #tpu.pipeline_mode<synchronous>, transform_indices = @transform_3, window_bounds = array<i64: 1, 128>}, {pipeline_mode = #tpu.pipeline_mode<synchronous>, transform_indices = @transform_4, window_bounds = array<i64: 128, 384>}, {pipeline_mode = #tpu.pipeline_mode<synchronous>, transform_indices = @transform_5, window_bounds = array<i64: 1, 384>}, {pipeline_mode = #tpu.pipeline_mode<synchronous>, transform_indices = @transform_6, window_bounds = array<i64: 128, 128>}, {pipeline_mode = #tpu.pipeline_mode<synchronous>, transform_indices = @transform_7, window_bounds = array<i64: 1, 128>}, {transform_indices = @transform_8, window_bounds = array<i64: 1, 16, 128>}]} {
    %c0 = arith.constant 0 : index
    %c0_0 = arith.constant 0 : index
    %c0_1 = arith.constant 0 : index
    %0 = vector.load %arg1[%c0, %c0_0, %c0_1] : memref<1x16x128xf32, #tpu.memory_space<vmem>>, vector<1x16x128xf32>
    %1 = vector.shape_cast %0 : vector<1x16x128xf32> to vector<16x128xf32>
    %cst = arith.constant 3.200000e+01 : f32
    %2 = math.sqrt %cst : f32
    %cst_2 = arith.constant 1.000000e+00 : f32
    %3 = arith.divf %cst_2, %2 : f32
    %c0_3 = arith.constant 0 : index
    %c0_4 = arith.constant 0 : index
    %4 = vector.load %arg3[%c0_3, %c0_4] : memref<1x128xf32, #tpu.memory_space<vmem>>, vector<1x128xf32>
    %c0_5 = arith.constant 0 : index
    %c0_6 = arith.constant 0 : index
    %5 = vector.load %arg4[%c0_5, %c0_6] : memref<1x128xf32, #tpu.memory_space<vmem>>, vector<1x128xf32>
    %cst_7 = arith.constant dense<0.000000e+00> : vector<16xf32>
    %6 = vector.multi_reduction <add>, %1, %cst_7 [1] : vector<16x128xf32> to vector<16xf32>
    %7 = vector.shape_cast %6 : vector<16xf32> to vector<16x1xf32>
    %cst_8 = arith.constant 1.280000e+02 : f32
    %8 = vector.broadcast %cst_8 : f32 to vector<16x1xf32>
    %9 = arith.divf %7, %8 : vector<16x1xf32>
    %10 = vector.broadcast %9 : vector<16x1xf32> to vector<16x128xf32>
    %11 = arith.subf %1, %10 : vector<16x128xf32>
    %12 = arith.mulf %11, %11 : vector<16x128xf32>
    %cst_9 = arith.constant dense<0.000000e+00> : vector<16xf32>
    %13 = vector.multi_reduction <add>, %12, %cst_9 [1] : vector<16x128xf32> to vector<16xf32>
    %14 = vector.shape_cast %13 : vector<16xf32> to vector<16x1xf32>
    %cst_10 = arith.constant 1.280000e+02 : f32
    %15 = vector.broadcast %cst_10 : f32 to vector<16x1xf32>
    %16 = arith.divf %14, %15 : vector<16x1xf32>
    %17 = vector.broadcast %9 : vector<16x1xf32> to vector<16x128xf32>
    %18 = arith.subf %1, %17 : vector<16x128xf32>
    %cst_11 = arith.constant 9.99999974E-6 : f32
    %19 = vector.broadcast %cst_11 : f32 to vector<16x1xf32>
    %20 = arith.addf %16, %19 : vector<16x1xf32>
    %21 = math.rsqrt %20 : vector<16x1xf32>
    %22 = vector.broadcast %21 : vector<16x1xf32> to vector<16x128xf32>
    %23 = arith.mulf %18, %22 : vector<16x128xf32>
    %24 = vector.broadcast %4 : vector<1x128xf32> to vector<16x128xf32>
    %25 = arith.mulf %23, %24 : vector<16x128xf32>
    %26 = vector.broadcast %5 : vector<1x128xf32> to vector<16x128xf32>
    %27 = arith.addf %25, %26 : vector<16x128xf32>
    %28 = arith.truncf %27 : vector<16x128xf32> to vector<16x128xbf16>
    %c0_12 = arith.constant 0 : index
    %c0_13 = arith.constant 0 : index
    %29 = vector.load %arg5[%c0_12, %c0_13] : memref<128x384xbf16, #tpu.memory_space<vmem>>, vector<128x384xbf16>
    %cst_14 = arith.constant dense<0.000000e+00> : vector<16x384xf32>
    %30 = tpu.matmul %28, %29, %cst_14 {dimension_numbers = #tpu.dot_dimension_numbers<[1], [0], [0], [1], [0, 0, 1, 1], [], []>} : vector<16x128xbf16>, vector<128x384xbf16>, vector<16x384xf32> -> vector<16x384xf32>
    %c0_15 = arith.constant 0 : index
    %c0_16 = arith.constant 0 : index
    %31 = vector.load %arg6[%c0_15, %c0_16] : memref<1x384xf32, #tpu.memory_space<vmem>>, vector<1x384xf32>
    %32 = vector.broadcast %31 : vector<1x384xf32> to vector<16x384xf32>
    %33 = arith.addf %30, %32 : vector<16x384xf32>
    %c0_17 = arith.constant 0 : index
    %c0_18 = arith.constant 0 : index
    %34 = vector.load %arg2[%c0_17, %c0_18] : memref<1x16xf32, #tpu.memory_space<vmem>>, vector<1x16xf32>
    %35 = vector.extract_strided_slice %33 {offsets = [0, 0], sizes = [16, 32], strides = [1, 1]} : vector<16x384xf32> to vector<16x32xf32>
    %36 = vector.broadcast %3 : f32 to vector<16x32xf32>
    %37 = arith.mulf %35, %36 : vector<16x32xf32>
    %38 = arith.truncf %37 : vector<16x32xf32> to vector<16x32xbf16>
    %39 = vector.extract_strided_slice %33 {offsets = [0, 128], sizes = [16, 32], strides = [1, 1]} : vector<16x384xf32> to vector<16x32xf32>
    %40 = arith.truncf %39 : vector<16x32xf32> to vector<16x32xbf16>
    %41 = vector.extract_strided_slice %33 {offsets = [0, 256], sizes = [16, 32], strides = [1, 1]} : vector<16x384xf32> to vector<16x32xf32>
    %42 = arith.truncf %41 : vector<16x32xf32> to vector<16x32xbf16>
    %cst_19 = arith.constant dense<0.000000e+00> : vector<16x16xf32>
    %43 = tpu.matmul %38, %40, %cst_19 {dimension_numbers = #tpu.dot_dimension_numbers<[1], [1], [0], [0], [0, 0, 1, 0], [], []>} : vector<16x32xbf16>, vector<16x32xbf16>, vector<16x16xf32> -> vector<16x16xf32>
    %44 = vector.broadcast %34 : vector<1x16xf32> to vector<16x16xf32>
    %45 = arith.addf %43, %44 : vector<16x16xf32>
    %cst_20 = arith.constant dense<0xFF800000> : vector<16xf32>
    %46 = vector.multi_reduction <maximumf>, %45, %cst_20 [1] : vector<16x16xf32> to vector<16xf32>
    %47 = vector.shape_cast %46 : vector<16xf32> to vector<16x1xf32>
    %48 = vector.broadcast %47 : vector<16x1xf32> to vector<16x16xf32>
    %49 = arith.subf %45, %48 : vector<16x16xf32>
    %50 = math.exp %49 : vector<16x16xf32>
    %cst_21 = arith.constant dense<0.000000e+00> : vector<16xf32>
    %51 = vector.multi_reduction <add>, %50, %cst_21 [1] : vector<16x16xf32> to vector<16xf32>
    %52 = vector.shape_cast %51 : vector<16xf32> to vector<16x1xf32>
    %53 = tpu.reciprocal %52 {approx = true} : vector<16x1xf32> -> vector<16x1xf32>
    %54 = vector.broadcast %53 : vector<16x1xf32> to vector<16x16xf32>
    %55 = arith.mulf %50, %54 : vector<16x16xf32>
    %56 = arith.truncf %55 : vector<16x16xf32> to vector<16x16xbf16>
    %cst_22 = arith.constant dense<0.000000e+00> : vector<16x32xf32>
    %57 = tpu.matmul %56, %42, %cst_22 {dimension_numbers = #tpu.dot_dimension_numbers<[1], [0], [0], [1], [0, 0, 1, 1], [], []>} : vector<16x16xbf16>, vector<16x32xbf16>, vector<16x32xf32> -> vector<16x32xf32>
    %58 = arith.truncf %57 : vector<16x32xf32> to vector<16x32xbf16>
    %c0_23 = arith.constant 0 : index
    %c0_24 = arith.constant 0 : index
    %59 = vector.load %arg10[%c0_23, %c0_24] : memref<16x128xbf16, #tpu.memory_space<vmem>>, vector<16x32xbf16>
    tpu.vector_store %arg10[%c0_23, %c0_24], %58 {strides = array<i32>} : memref<16x128xbf16, #tpu.memory_space<vmem>>, vector<16x32xbf16>,
    %60 = vector.extract_strided_slice %33 {offsets = [0, 32], sizes = [16, 32], strides = [1, 1]} : vector<16x384xf32> to vector<16x32xf32>
    %61 = vector.broadcast %3 : f32 to vector<16x32xf32>
    %62 = arith.mulf %60, %61 : vector<16x32xf32>
    %63 = arith.truncf %62 : vector<16x32xf32> to vector<16x32xbf16>
    %64 = vector.extract_strided_slice %33 {offsets = [0, 160], sizes = [16, 32], strides = [1, 1]} : vector<16x384xf32> to vector<16x32xf32>
    %65 = arith.truncf %64 : vector<16x32xf32> to vector<16x32xbf16>
    %66 = vector.extract_strided_slice %33 {offsets = [0, 288], sizes = [16, 32], strides = [1, 1]} : vector<16x384xf32> to vector<16x32xf32>
    %67 = arith.truncf %66 : vector<16x32xf32> to vector<16x32xbf16>
    %cst_25 = arith.constant dense<0.000000e+00> : vector<16x16xf32>
    %68 = tpu.matmul %63, %65, %cst_25 {dimension_numbers = #tpu.dot_dimension_numbers<[1], [1], [0], [0], [0, 0, 1, 0], [], []>} : vector<16x32xbf16>, vector<16x32xbf16>, vector<16x16xf32> -> vector<16x16xf32>
    %69 = vector.broadcast %34 : vector<1x16xf32> to vector<16x16xf32>
    %70 = arith.addf %68, %69 : vector<16x16xf32>
    %cst_26 = arith.constant dense<0xFF800000> : vector<16xf32>
    %71 = vector.multi_reduction <maximumf>, %70, %cst_26 [1] : vector<16x16xf32> to vector<16xf32>
    %72 = vector.shape_cast %71 : vector<16xf32> to vector<16x1xf32>
    %73 = vector.broadcast %72 : vector<16x1xf32> to vector<16x16xf32>
    %74 = arith.subf %70, %73 : vector<16x16xf32>
    %75 = math.exp %74 : vector<16x16xf32>
    %cst_27 = arith.constant dense<0.000000e+00> : vector<16xf32>
    %76 = vector.multi_reduction <add>, %75, %cst_27 [1] : vector<16x16xf32> to vector<16xf32>
    %77 = vector.shape_cast %76 : vector<16xf32> to vector<16x1xf32>
    %78 = tpu.reciprocal %77 {approx = true} : vector<16x1xf32> -> vector<16x1xf32>
    %79 = vector.broadcast %78 : vector<16x1xf32> to vector<16x16xf32>
    %80 = arith.mulf %75, %79 : vector<16x16xf32>
    %81 = arith.truncf %80 : vector<16x16xf32> to vector<16x16xbf16>
    %cst_28 = arith.constant dense<0.000000e+00> : vector<16x32xf32>
    %82 = tpu.matmul %81, %67, %cst_28 {dimension_numbers = #tpu.dot_dimension_numbers<[1], [0], [0], [1], [0, 0, 1, 1], [], []>} : vector<16x16xbf16>, vector<16x32xbf16>, vector<16x32xf32> -> vector<16x32xf32>
    %83 = arith.truncf %82 : vector<16x32xf32> to vector<16x32xbf16>
    %c0_29 = arith.constant 0 : index
    %c32 = arith.constant 32 : index
    %84 = vector.load %arg10[%c0_29, %c32] : memref<16x128xbf16, #tpu.memory_space<vmem>>, vector<16x32xbf16>
    tpu.vector_store %arg10[%c0_29, %c32], %83 {strides = array<i32>} : memref<16x128xbf16, #tpu.memory_space<vmem>>, vector<16x32xbf16>,
    %85 = vector.extract_strided_slice %33 {offsets = [0, 64], sizes = [16, 32], strides = [1, 1]} : vector<16x384xf32> to vector<16x32xf32>
    %86 = vector.broadcast %3 : f32 to vector<16x32xf32>
    %87 = arith.mulf %85, %86 : vector<16x32xf32>
    %88 = arith.truncf %87 : vector<16x32xf32> to vector<16x32xbf16>
    %89 = vector.extract_strided_slice %33 {offsets = [0, 192], sizes = [16, 32], strides = [1, 1]} : vector<16x384xf32> to vector<16x32xf32>
    %90 = arith.truncf %89 : vector<16x32xf32> to vector<16x32xbf16>
    %91 = vector.extract_strided_slice %33 {offsets = [0, 320], sizes = [16, 32], strides = [1, 1]} : vector<16x384xf32> to vector<16x32xf32>
    %92 = arith.truncf %91 : vector<16x32xf32> to vector<16x32xbf16>
    %cst_30 = arith.constant dense<0.000000e+00> : vector<16x16xf32>
    %93 = tpu.matmul %88, %90, %cst_30 {dimension_numbers = #tpu.dot_dimension_numbers<[1], [1], [0], [0], [0, 0, 1, 0], [], []>} : vector<16x32xbf16>, vector<16x32xbf16>, vector<16x16xf32> -> vector<16x16xf32>
    %94 = vector.broadcast %34 : vector<1x16xf32> to vector<16x16xf32>
    %95 = arith.addf %93, %94 : vector<16x16xf32>
    %cst_31 = arith.constant dense<0xFF800000> : vector<16xf32>
    %96 = vector.multi_reduction <maximumf>, %95, %cst_31 [1] : vector<16x16xf32> to vector<16xf32>
    %97 = vector.shape_cast %96 : vector<16xf32> to vector<16x1xf32>
    %98 = vector.broadcast %97 : vector<16x1xf32> to vector<16x16xf32>
    %99 = arith.subf %95, %98 : vector<16x16xf32>
    %100 = math.exp %99 : vector<16x16xf32>
    %cst_32 = arith.constant dense<0.000000e+00> : vector<16xf32>
    %101 = vector.multi_reduction <add>, %100, %cst_32 [1] : vector<16x16xf32> to vector<16xf32>
    %102 = vector.shape_cast %101 : vector<16xf32> to vector<16x1xf32>
    %103 = tpu.reciprocal %102 {approx = true} : vector<16x1xf32> -> vector<16x1xf32>
    %104 = vector.broadcast %103 : vector<16x1xf32> to vector<16x16xf32>
    %105 = arith.mulf %100, %104 : vector<16x16xf32>
    %106 = arith.truncf %105 : vector<16x16xf32> to vector<16x16xbf16>
    %cst_33 = arith.constant dense<0.000000e+00> : vector<16x32xf32>
    %107 = tpu.matmul %106, %92, %cst_33 {dimension_numbers = #tpu.dot_dimension_numbers<[1], [0], [0], [1], [0, 0, 1, 1], [], []>} : vector<16x16xbf16>, vector<16x32xbf16>, vector<16x32xf32> -> vector<16x32xf32>
    %108 = arith.truncf %107 : vector<16x32xf32> to vector<16x32xbf16>
    %c0_34 = arith.constant 0 : index
    %c64 = arith.constant 64 : index
    %109 = vector.load %arg10[%c0_34, %c64] : memref<16x128xbf16, #tpu.memory_space<vmem>>, vector<16x32xbf16>
    tpu.vector_store %arg10[%c0_34, %c64], %108 {strides = array<i32>} : memref<16x128xbf16, #tpu.memory_space<vmem>>, vector<16x32xbf16>,
    %110 = vector.extract_strided_slice %33 {offsets = [0, 96], sizes = [16, 32], strides = [1, 1]} : vector<16x384xf32> to vector<16x32xf32>
    %111 = vector.broadcast %3 : f32 to vector<16x32xf32>
    %112 = arith.mulf %110, %111 : vector<16x32xf32>
    %113 = arith.truncf %112 : vector<16x32xf32> to vector<16x32xbf16>
    %114 = vector.extract_strided_slice %33 {offsets = [0, 224], sizes = [16, 32], strides = [1, 1]} : vector<16x384xf32> to vector<16x32xf32>
    %115 = arith.truncf %114 : vector<16x32xf32> to vector<16x32xbf16>
    %116 = vector.extract_strided_slice %33 {offsets = [0, 352], sizes = [16, 32], strides = [1, 1]} : vector<16x384xf32> to vector<16x32xf32>
    %117 = arith.truncf %116 : vector<16x32xf32> to vector<16x32xbf16>
    %cst_35 = arith.constant dense<0.000000e+00> : vector<16x16xf32>
    %118 = tpu.matmul %113, %115, %cst_35 {dimension_numbers = #tpu.dot_dimension_numbers<[1], [1], [0], [0], [0, 0, 1, 0], [], []>} : vector<16x32xbf16>, vector<16x32xbf16>, vector<16x16xf32> -> vector<16x16xf32>
    %119 = vector.broadcast %34 : vector<1x16xf32> to vector<16x16xf32>
    %120 = arith.addf %118, %119 : vector<16x16xf32>
    %cst_36 = arith.constant dense<0xFF800000> : vector<16xf32>
    %121 = vector.multi_reduction <maximumf>, %120, %cst_36 [1] : vector<16x16xf32> to vector<16xf32>
    %122 = vector.shape_cast %121 : vector<16xf32> to vector<16x1xf32>
    %123 = vector.broadcast %122 : vector<16x1xf32> to vector<16x16xf32>
    %124 = arith.subf %120, %123 : vector<16x16xf32>
    %125 = math.exp %124 : vector<16x16xf32>
    %cst_37 = arith.constant dense<0.000000e+00> : vector<16xf32>
    %126 = vector.multi_reduction <add>, %125, %cst_37 [1] : vector<16x16xf32> to vector<16xf32>
    %127 = vector.shape_cast %126 : vector<16xf32> to vector<16x1xf32>
    %128 = tpu.reciprocal %127 {approx = true} : vector<16x1xf32> -> vector<16x1xf32>
    %129 = vector.broadcast %128 : vector<16x1xf32> to vector<16x16xf32>
    %130 = arith.mulf %125, %129 : vector<16x16xf32>
    %131 = arith.truncf %130 : vector<16x16xf32> to vector<16x16xbf16>
    %cst_38 = arith.constant dense<0.000000e+00> : vector<16x32xf32>
    %132 = tpu.matmul %131, %117, %cst_38 {dimension_numbers = #tpu.dot_dimension_numbers<[1], [0], [0], [1], [0, 0, 1, 1], [], []>} : vector<16x16xbf16>, vector<16x32xbf16>, vector<16x32xf32> -> vector<16x32xf32>
    %133 = arith.truncf %132 : vector<16x32xf32> to vector<16x32xbf16>
    %c0_39 = arith.constant 0 : index
    %c96 = arith.constant 96 : index
    %134 = vector.load %arg10[%c0_39, %c96] : memref<16x128xbf16, #tpu.memory_space<vmem>>, vector<16x32xbf16>
    tpu.vector_store %arg10[%c0_39, %c96], %133 {strides = array<i32>} : memref<16x128xbf16, #tpu.memory_space<vmem>>, vector<16x32xbf16>,
    %c0_40 = arith.constant 0 : index
    %c0_41 = arith.constant 0 : index
    %135 = vector.load %arg10[%c0_40, %c0_41] : memref<16x128xbf16, #tpu.memory_space<vmem>>, vector<16x128xbf16>
    %c0_42 = arith.constant 0 : index
    %c0_43 = arith.constant 0 : index
    %136 = vector.load %arg7[%c0_42, %c0_43] : memref<128x128xbf16, #tpu.memory_space<vmem>>, vector<128x128xbf16>
    %cst_44 = arith.constant dense<0.000000e+00> : vector<16x128xf32>
    %137 = tpu.matmul %135, %136, %cst_44 {dimension_numbers = #tpu.dot_dimension_numbers<[1], [0], [0], [1], [0, 0, 1, 1], [], []>} : vector<16x128xbf16>, vector<128x128xbf16>, vector<16x128xf32> -> vector<16x128xf32>
    %c0_45 = arith.constant 0 : index
    %c0_46 = arith.constant 0 : index
    %138 = vector.load %arg8[%c0_45, %c0_46] : memref<1x128xf32, #tpu.memory_space<vmem>>, vector<1x128xf32>
    %139 = vector.broadcast %138 : vector<1x128xf32> to vector<16x128xf32>
    %140 = arith.addf %137, %139 : vector<16x128xf32>
    %141 = arith.addf %1, %140 : vector<16x128xf32>
    %c0_47 = arith.constant 0 : index
    %c0_48 = arith.constant 0 : index
    %c0_49 = arith.constant 0 : index
    %142 = vector.load %arg9[%c0_47, %c0_48, %c0_49] : memref<1x16x128xf32, #tpu.memory_space<vmem>>, vector<1x16x128xf32>
    %143 = vector.shape_cast %142 : vector<1x16x128xf32> to vector<16x128xf32>
    %144 = vector.shape_cast %141 : vector<16x128xf32> to vector<1x16x128xf32>
    tpu.vector_store %arg9[%c0_47, %c0_48, %c0_49], %144 {strides = array<i32>} : memref<1x16x128xf32, #tpu.memory_space<vmem>>, vector<1x16x128xf32>,
    return
  }
  func.func @transform_0(%arg0: i32) -> (i32, i32, i32) {
    %c0_i32 = arith.constant 0 : i32
    %c0_i32_0 = arith.constant 0 : i32
    %c0_i32_1 = arith.constant 0 : i32
    return %arg0, %c0_i32, %c0_i32_0 : i32, i32, i32
  }
  func.func @transform_1(%arg0: i32) -> (i32, i32) {
    %c0_i32 = arith.constant 0 : i32
    %c0_i32_0 = arith.constant 0 : i32
    %c0_i32_1 = arith.constant 0 : i32
    return %c0_i32, %c0_i32_0 : i32, i32
  }
  func.func @transform_2(%arg0: i32) -> (i32, i32) {
    %c0_i32 = arith.constant 0 : i32
    %c0_i32_0 = arith.constant 0 : i32
    %c0_i32_1 = arith.constant 0 : i32
    return %c0_i32, %c0_i32_0 : i32, i32
  }
  func.func @transform_3(%arg0: i32) -> (i32, i32) {
    %c0_i32 = arith.constant 0 : i32
    %c0_i32_0 = arith.constant 0 : i32
    %c0_i32_1 = arith.constant 0 : i32
    return %c0_i32, %c0_i32_0 : i32, i32
  }
  func.func @transform_4(%arg0: i32) -> (i32, i32) {
    %c0_i32 = arith.constant 0 : i32
    %c0_i32_0 = arith.constant 0 : i32
    %c0_i32_1 = arith.constant 0 : i32
    return %c0_i32, %c0_i32_0 : i32, i32
  }
  func.func @transform_5(%arg0: i32) -> (i32, i32) {
    %c0_i32 = arith.constant 0 : i32
    %c0_i32_0 = arith.constant 0 : i32
    %c0_i32_1 = arith.constant 0 : i32
    return %c0_i32, %c0_i32_0 : i32, i32
  }
  func.func @transform_6(%arg0: i32) -> (i32, i32) {
    %c0_i32 = arith.constant 0 : i32
    %c0_i32_0 = arith.constant 0 : i32
    %c0_i32_1 = arith.constant 0 : i32
    return %c0_i32, %c0_i32_0 : i32, i32
  }
  func.func @transform_7(%arg0: i32) -> (i32, i32) {
    %c0_i32 = arith.constant 0 : i32
    %c0_i32_0 = arith.constant 0 : i32
    %c0_i32_1 = arith.constant 0 : i32
    return %c0_i32, %c0_i32_0 : i32, i32
  }
  func.func @transform_8(%arg0: i32) -> (i32, i32, i32) {
    %c0_i32 = arith.constant 0 : i32
    %c0_i32_0 = arith.constant 0 : i32
    %c0_i32_1 = arith.constant 0 : i32
    return %arg0, %c0_i32, %c0_i32_0 : i32, i32, i32
  }
}

</mosaic_0001>

<bundles_post_ra>
// kernel: tpu_custom_call.1
= control target key start
LH: loop header
LB: loop body
LE: loop exit
PB: predicated region body
PF: predicated region fallthrough
CT: control target
= control target key end

     0   :  { %13 = vsyncpa [#allocation4], 0  ;;  %s2763_s0 = inlined_call_operand.hbm [shape: f32[2,16,128], index: 0, kind: input, shape index: {}]   ;;  %s2764_s1 = inlined_call_operand.hbm [shape: f32[1,16], index: 1, kind: input, shape index: {}]   ;;  %s2765_s2 = inlined_call_operand.hbm [shape: f32[1,128], index: 2, kind: input, shape index: {}]   ;;  %s2766_s3 = inlined_call_operand.hbm [shape: f32[1,128], index: 3, kind: input, shape index: {}]   ;;  %s2767_s4 = inlined_call_operand.hbm [shape: bf16[128,384], index: 4, kind: input, shape index: {}]   ;;  %s2768_s5 = inlined_call_operand.hbm [shape: f32[1,384], index: 5, kind: input, shape index: {}]   ;;  %s2769_s6 = inlined_call_operand.hbm [shape: bf16[128,128], index: 6, kind: input, shape index: {}]   ;;  %s2770_s7 = inlined_call_operand.hbm [shape: f32[1,128], index: 7, kind: input, shape index: {}]   ;;  %s2771_s8 = inlined_call_operand.hbm [shape: f32[2,16,128], index: 8, kind: output, shape index: {}]  }
   0x1   :  { %15 = vsyncpa [#allocation4 + $0x1], 0 }
   0x2   :  { %16 = vsyncpa [#allocation7], 0 }
   0x3   :  { %17 = vsyncpa [#allocation10], 0 }
   0x4   :  { %18 = vsyncpa [#allocation13], 0 }
   0x5   :  { %19 = vsyncpa [#allocation16], 0 }
   0x6   :  { %20 = vsyncpa [#allocation5], 0 }
   0x7   :  { %22 = vsyncpa [#allocation5 + $0x1], 0  ;;  %s2291_s27 = smov 0   ;;  %s2293_s28 = smov 0  }
   0x8   :  { %s2295_s29 = smov 0   ;;  %s2297_s30 = smov 0  }
   0x9 LB: > { %s2223_s9 = smov [#allocation6]   ;;  %s2312_s11 = sadd.s32 4294967295, %s2221_s30   ;;  %s2221_s30 = sphi %s2297_s30, %s2798_s30   ;;  %s2217_s29 = sphi %s2295_s29, %s2797_s29   ;;  %s2213_s28 = sphi %s2293_s28, %s2796_s28   ;;  %s2209_s27 = sphi %s2291_s27, %s2795_s27  }
   0xa   : > { %s245_s10 = sshll.u32 %s2223_s9, 4  ;;  %p1511_p0 = scmp.ge.s32.totalorder %s2221_s30, 1  ;;  %s2317_s10 = int_to_ptr.vmem [resolvable:$true] %s245_s10 }
   0xb   : > { %p2772_p1 = scmp.eq.s32.totalorder %s2312_s11, 0  ;;  %p232_p2 = scmp.lt.s32.totalorder %s2221_s30, 3 }
   0xc   : > { %s2224_s13 = smov [#allocation9]   ;;  %s2225_s15 = smov [#allocation12]  }
   0xd   : > { %p2319_p3 = pnand %p1511_p0, %p232_p2  ;;  %s267_s14 = sshll.u32 %s2224_s13, 4  ;;  %s2326_s14 = int_to_ptr.vmem [resolvable:$true] %s267_s14 }
   0xe   : > { %s291_s16 = sshll.u32 %s2225_s15, 4  ;;  %s2226_s18 = smov [#allocation8]   ;;  %s2334_s16 = int_to_ptr.vmem [resolvable:$true] %s291_s16 }
   0xf   : > { %s2775_s12 = scalar_select %p2319_p3, 1, 0 }
  0x10   : > { %p1738_p5 = pneg %p2319_p3  ;;  %s2336_s19 = sshll.u32 %s2226_s18, 4  ;;  %s257_s19 = int_to_ptr.vmem [resolvable:$true] %s2336_s19 }
  0x11   : > { %s1913_s22 = scalar_lea.hbm %s2764_s1, 16 }
  0x12   : > { %p2330_p6 = pnand %p1738_p5, %p2772_p1  ;;  %p1914_p7 = scmp.ne.s32.totalorder %s2764_s1, %s1913_s22 }
  0x13   : > { %p1920_p11 = scmp.lt.u32.totalorder %s1913_s22, %s2764_s1 }
  0x14   : > { %p2346_p8 = pneg %p2330_p6 }
  0x16   : > { %p1916_p9 = pnand %p2346_p8, %p1914_p7 }
  0x18   : > { %p1917_p10 = pneg %p1916_p9 }
  0x1a   : > { %p1922_p12 = pnand %p1920_p11, %p1917_p10 }
  0x1c   : > { %1925 = shalt.err (!%p1922_p12)
}
  0x1d   : > { %s1926_s13 = scalar_lea.vmem %s2317_s10, 16  ;;  %s1933_s15 = scalar_lea.vmem %s2317_s10, 32 }
  0x1e   : > { %p1927_p13 = scmp.ne.s32.totalorder %s2317_s10, %s1926_s13  ;;  %p1934_p5 = scmp.lt.s32.totalorder %s2317_s10, %s2317_s10 }
  0x1f   : > { %p1935_p7 = scmp.lt.s32.totalorder %s1933_s15, %s1926_s13 }
  0x20   : > { %p1929_p0 = pnand %p1927_p13, %p2346_p8 }
  0x21   : > { %p1936_p9 = por %p1935_p7, %p1934_p5 }
  0x22   : > { %p1930_p2 = pneg %p1929_p0 }
  0x24   : > { %p1937_p4 = pnand %p1936_p9, %p1930_p2 }
  0x26   : > { %1940 = shalt.err (!%p1937_p4)
}
  0x27   : > { %1741 = dma.hbm_to_vmem [thread:$0]  (!%p2330_p6), %s2764_s1, 16, %s2317_s10, [#allocation7]  }
  0x28   : > { %s1941_s23 = scalar_lea.hbm %s2766_s3, 16 }
  0x29   : > { %p1942_p10 = scmp.ne.s32.totalorder %s2766_s3, %s1941_s23  ;;  %p1948_p4 = scmp.lt.u32.totalorder %s1941_s23, %s2766_s3 }
  0x2b   : > { %p1944_p11 = pnand %p1942_p10, %p2346_p8 }
  0x2d   : > { %p1945_p12 = pneg %p1944_p11 }
  0x2f   : > { %p1950_p13 = pnand %p1948_p4, %p1945_p12 }
  0x31   : > { %1953 = shalt.err (!%p1950_p13)
}
  0x32   : > { %s1954_s10 = scalar_lea.vmem %s2326_s14, 16  ;;  %s1961_s15 = scalar_lea.vmem %s2326_s14, 32 }
  0x33   : > { %p1955_p0 = scmp.ne.s32.totalorder %s2326_s14, %s1954_s10  ;;  %p1962_p7 = scmp.lt.s32.totalorder %s2326_s14, %s2326_s14 }
  0x34   : > { %p1963_p9 = scmp.lt.s32.totalorder %s1961_s15, %s1954_s10 }
  0x35   : > { %p1957_p2 = pnand %p1955_p0, %p2346_p8 }
  0x36   : > { %p1964_p10 = por %p1963_p9, %p1962_p7 }
  0x37   : > { %p1958_p5 = pneg %p1957_p2 }
  0x39   : > { %p1965_p11 = pnand %p1964_p10, %p1958_p5 }
  0x3b   : > { %1968 = shalt.err (!%p1965_p11)
}
  0x3c   : > { %1747 = dma.hbm_to_vmem [thread:$0]  (!%p2330_p6), %s2766_s3, 16, %s2326_s14, [#allocation10]  }
  0x3d   : > { %s1969_s23 = scalar_lea.hbm %s2768_s5, 48 }
  0x3e   : > { %p1970_p12 = scmp.ne.s32.totalorder %s2768_s5, %s1969_s23  ;;  %p1976_p0 = scmp.lt.u32.totalorder %s1969_s23, %s2768_s5 }
  0x40   : > { %p1972_p4 = pnand %p1970_p12, %p2346_p8 }
  0x42   : > { %p1973_p13 = pneg %p1972_p4 }
  0x44   : > { %p1978_p2 = pnand %p1976_p0, %p1973_p13 }
  0x46   : > { %1981 = shalt.err (!%p1978_p2)
}
  0x47   : > { %s1982_s14 = scalar_lea.vmem %s2334_s16, 48  ;;  %s1989_s10 = scalar_lea.vmem %s2334_s16, 64 }
  0x48   : > { %p1983_p5 = scmp.ne.s32.totalorder %s2334_s16, %s1982_s14  ;;  %p1990_p10 = scmp.lt.s32.totalorder %s2334_s16, %s2334_s16 }
  0x49   : > { %p1991_p11 = scmp.lt.s32.totalorder %s1989_s10, %s1982_s14 }
  0x4a   : > { %p1985_p7 = pnand %p1983_p5, %p2346_p8 }
  0x4b   : > { %p1992_p12 = por %p1991_p11, %p1990_p10 }
  0x4c   : > { %p1986_p9 = pneg %p1985_p7 }
  0x4e   : > { %p1993_p4 = pnand %p1992_p12, %p1986_p9 }
  0x50   : > { %1996 = shalt.err (!%p1993_p4)
}
  0x51   : > { %1753 = dma.hbm_to_vmem [thread:$0]  (!%p2330_p6), %s2768_s5, 48, %s2334_s16, [#allocation13]  }
  0x52   : > { %s2227_s20 = smov [#allocation11]   ;;  %s1997_s24 = scalar_lea.hbm %s2765_s2, 16 }
  0x53   : > { %s277_s21 = sshll.u32 %s2227_s20, 4  ;;  %p1998_p13 = scmp.ne.s32.totalorder %s2765_s2, %s1997_s24  ;;  %s278_s21 = int_to_ptr.vmem [resolvable:$true] %s277_s21 }
  0x54   : > { %p2004_p5 = scmp.lt.u32.totalorder %s1997_s24, %s2765_s2 }
  0x55   : > { %p2000_p0 = pnand %p1998_p13, %p2346_p8 }
  0x57   : > { %p2001_p2 = pneg %p2000_p0 }
  0x59   : > { %p2006_p7 = pnand %p2004_p5, %p2001_p2 }
  0x5b   : > { %2009 = shalt.err (!%p2006_p7)
}
  0x5c   : > { %s2010_s16 = scalar_lea.vmem %s257_s19, 16  ;;  %s2017_s10 = scalar_lea.vmem %s257_s19, 32 }
  0x5d   : > { %p2011_p9 = scmp.ne.s32.totalorder %s257_s19, %s2010_s16  ;;  %p2018_p12 = scmp.lt.s32.totalorder %s257_s19, %s257_s19 }
  0x5e   : > { %p2019_p4 = scmp.lt.s32.totalorder %s2017_s10, %s2010_s16 }
  0x5f   : > { %p2013_p10 = pnand %p2011_p9, %p2346_p8 }
  0x60   : > { %p2020_p1 = por %p2019_p4, %p2018_p12 }
  0x61   : > { %p2014_p11 = pneg %p2013_p10 }
  0x63   : > { %p2021_p3 = pnand %p2020_p1, %p2014_p11 }
  0x65   : > { %2024 = shalt.err (!%p2021_p3)
}
  0x66   : > { %1744 = dma.hbm_to_vmem [thread:$0]  (!%p2330_p6), %s2765_s2, 16, %s257_s19, [#allocation7]  }
  0x67   : > { %s2025_s23 = scalar_lea.hbm %s2767_s4, 3072 }
  0x68   : > { %p2026_p13 = scmp.ne.s32.totalorder %s2767_s4, %s2025_s23  ;;  %p2032_p3 = scmp.lt.u32.totalorder %s2025_s23, %s2767_s4 }
  0x6a   : > { %p2028_p0 = pnand %p2026_p13, %p2346_p8 }
  0x6c   : > { %p2029_p1 = pneg %p2028_p0 }
  0x6e   : > { %p2034_p2 = pnand %p2032_p3, %p2029_p1 }
  0x70   : > { %2037 = shalt.err (!%p2034_p2)
}
  0x71   : > { %s2038_s14 = scalar_lea.vmem %s278_s21, 3072  ;;  %p2046_p10 = scmp.lt.s32.totalorder %s278_s21, %s278_s21 }
  0x72   : > { %p2039_p5 = scmp.ne.s32.totalorder %s278_s21, %s2038_s14  ;;  %p2047_p11 = scmp.lt.s32.totalorder %s2038_s14, %s2038_s14 }
  0x74   : > { %p2041_p7 = pnand %p2039_p5, %p2346_p8  ;;  %p2048_p12 = por %p2047_p11, %p2046_p10 }
  0x76   : > { %p2042_p9 = pneg %p2041_p7 }
  0x78   : > { %p2049_p4 = pnand %p2048_p12, %p2042_p9 }
  0x7a   : > { %2052 = shalt.err (!%p2049_p4)
}
  0x7b   : > { %s2228_s19 = smov 192   ;;  %s2229_s16 = smov 12  }
  0x7c   : > { %1750 = dma.hbm_to_vmem [thread:$0]  (!%p2330_p6), %s2767_s4, 3072, %s278_s21, [#allocation10], %s2228_s19, %s2228_s19, %s2229_s16  }
  0x7d   : > { %s2230_s18 = smov [#allocation14]   ;;  %s2053_s24 = scalar_lea.hbm %s2769_s6, 1024 }
  0x7e   : > { %s301_s20 = sshll.u32 %s2230_s18, 4  ;;  %p2054_p13 = scmp.ne.s32.totalorder %s2769_s6, %s2053_s24  ;;  %s302_s20 = int_to_ptr.vmem [resolvable:$true] %s301_s20 }
  0x7f   : > { %p2060_p3 = scmp.lt.u32.totalorder %s2053_s24, %s2769_s6 }
  0x80   : > { %p2056_p0 = pnand %p2054_p13, %p2346_p8 }
  0x82   : > { %p2057_p1 = pneg %p2056_p0 }
  0x84   : > { %p2062_p2 = pnand %p2060_p3, %p2057_p1 }
  0x86   : > { %2065 = shalt.err (!%p2062_p2)
}
  0x87   : > { %s2066_s21 = scalar_lea.vmem %s302_s20, 1024  ;;  %p2074_p10 = scmp.lt.s32.totalorder %s302_s20, %s302_s20 }
  0x88   : > { %p2067_p5 = scmp.ne.s32.totalorder %s302_s20, %s2066_s21  ;;  %p2075_p11 = scmp.lt.s32.totalorder %s2066_s21, %s2066_s21 }
  0x8a   : > { %p2069_p7 = pnand %p2067_p5, %p2346_p8  ;;  %p2076_p12 = por %p2075_p11, %p2074_p10 }
  0x8c   : > { %p2070_p9 = pneg %p2069_p7 }
  0x8e   : > { %p2077_p4 = pnand %p2076_p12, %p2070_p9 }
  0x90   : > { %2080 = shalt.err (!%p2077_p4)
}
  0x91   : > { %s2231_s19 = smov 64   ;;  %s2232_s16 = smov 4  }
  0x92   : > { %1756 = dma.hbm_to_vmem [thread:$0]  (!%p2330_p6), %s2769_s6, 1024, %s302_s20, [#allocation13], %s2231_s19, %s2231_s19, %s2232_s16  }
  0x93   : > { %s2233_s18 = smov [#allocation15]   ;;  %s2081_s26 = scalar_lea.hbm %s2770_s7, 16 }
  0x94   : > { %s315_s22 = sshll.u32 %s2233_s18, 4  ;;  %p2082_p13 = scmp.ne.s32.totalorder %s2770_s7, %s2081_s26  ;;  %s316_s22 = int_to_ptr.vmem [resolvable:$true] %s315_s22 }
  0x95   : > { %p2088_p3 = scmp.lt.u32.totalorder %s2081_s26, %s2770_s7 }
  0x96   : > { %p2084_p0 = pnand %p2082_p13, %p2346_p8 }
  0x98   : > { %p2085_p1 = pneg %p2084_p0 }
  0x9a   : > { %p2090_p2 = pnand %p2088_p3, %p2085_p1 }
  0x9c   : > { %2093 = shalt.err (!%p2090_p2)
}
  0x9d   : > { %s2094_s20 = scalar_lea.vmem %s316_s22, 16  ;;  %s2101_s19 = scalar_lea.vmem %s316_s22, 32 }
  0x9e   : > { %p2095_p5 = scmp.ne.s32.totalorder %s316_s22, %s2094_s20  ;;  %p2102_p10 = scmp.lt.s32.totalorder %s316_s22, %s316_s22 }
  0x9f   : > { %p2103_p11 = scmp.lt.s32.totalorder %s2101_s19, %s2094_s20 }
  0xa0   : > { %p2097_p7 = pnand %p2095_p5, %p2346_p8 }
  0xa1   : > { %p2104_p12 = por %p2103_p11, %p2102_p10 }
  0xa2   : > { %p2098_p9 = pneg %p2097_p7 }
  0xa4   : > { %p2105_p4 = pnand %p2104_p12, %p2098_p9 }
  0xa6   : > { %2108 = shalt.err (!%p2105_p4)
}
  0xa7   : > { %1759 = dma.hbm_to_vmem [thread:$0]  (!%p2330_p6), %s2770_s7, 16, %s316_s22, [#allocation16]  }
  0xa8   : > { %s1510_s25 = sadd.s32 4294967294, %s2221_s30   ;;  %s2491_s17 = sadd.s32 1, %s2221_s30  }
  0xa9   : > { %s35_s15 = sadd.s32 1, %s2217_s29  ;;  %s32_s18 = ssub.s32 %s2221_s30, %s2491_s17 }
  0xaa   : > { %p42_p8 = scmp.ne.s32.totalorder %s2217_s29, %s2213_s28  ;;  %p33_p13 = scmp.eq.s32.totalorder %s32_s18, 0 }
  0xab   : > { %p43_p0 = scmp.eq.s32.totalorder %s2221_s30, 0  ;;  %p48_p1 = scmp.ne.s32.totalorder %s2213_s28, %s2209_s27 }
  0xac   : > { %p219_p3 = scmp.eq.s32.totalorder %s2312_s11, 1  ;;  %p2778_p5 = scmp.eq.s32.totalorder %s2312_s11, 0 }
  0xad   : > { %s2503_s23 = scalar_select %p33_p13, %s2217_s29, %s35_s15  }
  0xae   : > { %p44_p2 = por %p43_p0, %p42_p8  ;;  %p2507_p7 = por %p2778_p5, %p48_p1 }
  0xaf   : > { %p2511_p6 = por %p219_p3, %p42_p8  ;;  %p225_p9 = scmp.eq.s32.totalorder %s1510_s25, 1 }
  0xb0   : > { %p1775_p10 = scmp.lt.s32.totalorder %s2221_s30, 2  ;;  %s326_s26 = sand.u32 1, %s2217_s29  }
  0xb1   : > { %s2780_s22 = scalar_select %p2511_p6, 1, 0 }
  0xb2   : > { %p2517_p11 = por %p225_p9, %p48_p1  ;;  %s1520_s13 = sshll.u32 %s326_s26, 4 }
  0xb3   : > { %s1582_s14 = sshll.u32 %s2221_s30, 8  ;;  %s330_s16 = scalar_lea.vmem [#allocation3], %s1520_s13 }
  0xb4   : > { %s2781_s9 = scalar_select %p2517_p11, 1, 0 }
  0xb5   : > { %s2525_s19 = scalar_lea.hbm %s2763_s0, %s1582_s14  ;;  %s337_s10 = sshll.u32 %s330_s16, 4  ;;  %s2531_s10 = int_to_ptr.vmem [resolvable:$true] %s337_s10 }
  0xb6   : > { %p2527_p12 = pnand %p1775_p10, %p44_p2  ;;  %s2533_s15 = scalar_lea.sflag [#allocation4], %s326_s26 }
  0xb7   : > { %s2109_s18 = scalar_lea.hbm %s2525_s19, 256  ;;  %s2114_s21 = scalar_lea.hbm %s2763_s0, 512 }
  0xb8   : > { %p2110_p4 = scmp.ne.s32.totalorder %s2525_s19, %s2109_s18  ;;  %p2111_p8 = pneg %p2527_p12 }
  0xb9   : > { %p2115_p1 = scmp.lt.u32.totalorder %s2525_s19, %s2763_s0  ;;  %p2116_p3 = scmp.lt.u32.totalorder %s2114_s21, %s2109_s18 }
  0xba   : > { %p2112_p13 = pnand %p2111_p8, %p2110_p4  ;;  %p2118_p5 = scmp.lt.u32.totalorder %s2109_s18, %s2525_s19 }
  0xbb   : > { %p2117_p2 = por %p2116_p3, %p2115_p1 }
  0xbc   : > { %p2113_p0 = pneg %p2112_p13 }
  0xbd   : > { %p2119_p9 = por %p2118_p5, %p2117_p2 }
  0xbf   : > { %p2120_p10 = pnand %p2119_p9, %p2113_p0 }
  0xc1   : > { %2123 = shalt.err (!%p2120_p10)
}
  0xc2   : > { %s2124_s26 = scalar_lea.vmem %s2531_s10, 256  ;;  %s2234_s13 = smov [#allocation3]  }
  0xc3   : > { %p2125_p4 = scmp.ne.s32.totalorder %s2531_s10, %s2124_s26  ;;  %s2129_s14 = sshll.u32 %s2234_s13, 4  ;;  %s2130_s14 = int_to_ptr.vmem [resolvable:$false] %s2129_s14 }
  0xc4   : > { %s2131_s20 = scalar_lea.vmem %s2130_s14, 512  ;;  %p2132_p6 = scmp.lt.s32.totalorder %s2531_s10, %s2130_s14 }
  0xc5   : > { %p2127_p13 = pnand %p2125_p4, %p2111_p8  ;;  %p2133_p1 = scmp.lt.s32.totalorder %s2131_s20, %s2124_s26 }
  0xc7   : > { %p2128_p11 = pneg %p2127_p13  ;;  %p2134_p3 = por %p2133_p1, %p2132_p6 }
  0xc9   : > { %p2135_p2 = pnand %p2134_p3, %p2128_p11 }
  0xcb   : > { %2138 = shalt.err (!%p2135_p2)
}
  0xcc   : > { %s2235_s18 = smov 128   ;;  %s2236_s21 = smov 8  }
  0xcd   : > { %1763 = dma.hbm_to_vmem [thread:$0]  (!%p2527_p12), %s2525_s19, 256, %s2531_s10, %s2533_s15, %s2235_s18, %s2235_s18, %s2236_s21  }
  0xce   : > { %p2783_p8 = scmp.ne.s32.totalorder %s2775_s12, 0 }
  0xcf   : > { %s2564_s16 = sand.u32 (!%p2783_p8), 1, %s2213_s28  }
  0xd0   : > { %349 = sbr.rel (%p2783_p8) target bundleno = 2449 (0x991), region = 52  ;;  %s1524_s26 = sshll.u32 (!%p2783_p8), %s2564_s16, 4 }
  0xd1   : > { %s352_s13 = scalar_lea.sflag (!%p2783_p8), [#allocation4], %s2564_s16  ;;  %s355_s14 = scalar_lea.vmem (!%p2783_p8), [#allocation3], %s1524_s26 }
  0xd7   : > { %2184 = dma.done.wait (%p2507_p7), %s352_s13, 256  }
  0xd8   : > { %2186 = vsyncadd (%p2507_p7), %s352_s13, 4294967040  ;;  %p2784_p6 = scmp.eq.s32.totalorder %s2312_s11, 0 }
  0xda   : > { %2188 = dma.done.wait (%p2784_p6), [#allocation7], 32   ;;  %p2785_p11 = pmov %p2784_p6 }
  0xdb   : > { %p2786_p12 = pmov %p2784_p6 }
  0xdc   : > { %2190 = vsyncadd (%p2785_p11), [#allocation7], 4294967264 }
  0xdd   : > { %2192 = dma.done.wait (%p2786_p12), [#allocation10], 3088   ;;  %p2787_p0 = pmov %p2784_p6 }
  0xdf   : > { %2194 = vsyncadd (%p2787_p0), [#allocation10], 4294964208  ;;  %p2788_p5 = pmov %p2787_p0 }
  0xe0   : > { %p2789_p9 = pmov %p2787_p0 }
  0xe1   : > { %2196 = dma.done.wait (%p2788_p5), [#allocation13], 1072  }
  0xe2   : > { %2198 = vsyncadd (%p2789_p9), [#allocation13], 4294966224  ;;  %p2790_p7 = pmov %p2787_p0 }
  0xe3   : > { %p2791_p10 = pmov %p2787_p0 }
  0xe4   : > { %2200 = dma.done.wait (%p2790_p7), [#allocation16], 16  }
  0xe5   : > { %2202 = vsyncadd (%p2791_p10), [#allocation16], 4294967280  ;;  %v2590_v0 = vld [vmem:[%s355_s14] sm:$0xff]  ;;  %v2592_v1 = vld [vmem:[%s355_s14 + $0x8] sm:$0xff]  ;;  %v2237_v4 = vmov 0.0   ;;  %v2238_v30 = vmov 0   ;;  %v495_v53 = vlaneseq }
  0xe6   : > { %421 = vadd.xlane.f32.xlu0 %v2590_v0  ;;  %v1837_v2 = vld [vmem:[#allocation11 + $0x4] ss:$12 sps:$4 sm:$0xff]   ;;  %v1839_v3 = vld [vmem:[#allocation11] ss:$12 sps:$4 sm:$0xff]   ;;  %1618 = vmatprep.subr.bf16.mxu1 %v2237_v4  ;;  %v1840_v5 = vld [vmem:[#allocation11 + $0x8] ss:$12 sps:$4 sm:$0xff]  }
  0xe7   : > { %v1841_v6 = vld [vmem:[#allocation11 + $0x1c] ss:$12 sps:$4 sm:$0xff]   ;;  %638 = vmatprep.subr.bf16.mxu0 %v1837_v2  ;;  %1619 = vmatpush3.bf16.msra.mxu1 %v1840_v5  ;;  %v1843_v15 = vld [vmem:[#allocation11 + $0x18] ss:$12 sps:$4 sm:$0xff]   ;;  %v1844_v16 = vld [vmem:[#allocation11 + $0x20] ss:$12 sps:$4 sm:$0xff]  }
  0xe8   : > { %639 = vmatpush1.bf16.msra.mxu0 %v1839_v3  ;;  %1620 = vmatprep.subr.bf16.mxu1 %v2237_v4  ;;  %v1845_v17 = vld [vmem:[#allocation11 + $0x34] ss:$12 sps:$4 sm:$0xff]   ;;  %v1847_v18 = vld [vmem:[#allocation11 + $0x30] ss:$12 sps:$4 sm:$0xff]   ;;  %v1848_v19 = vld [vmem:[#allocation11 + $0x38] ss:$12 sps:$4 sm:$0xff]  }
  0xe9   : > { %640 = vmatprep.subr.bf16.mxu0 %v1841_v6  ;;  %v1849_v20 = vld [vmem:[#allocation11 + $0x4c] ss:$12 sps:$4 sm:$0xff]   ;;  %v1851_v21 = vld [vmem:[#allocation11 + $0x48] ss:$12 sps:$4 sm:$0xff]   ;;  %v1852_v22 = vld [vmem:[#allocation11 + $0x50] ss:$12 sps:$4 sm:$0xff]   ;;  %670 = vmatprep.mubr.bf16.mxu0 %v2238_v30 }
  0xea   : > { %423 = vadd.xlane.f32.xlu0 %v2592_v1  ;;  %v1853_v23 = vld [vmem:[#allocation11 + $0x64] ss:$12 sps:$4 sm:$0xff]   ;;  %v1855_v24 = vld [vmem:[#allocation11 + $0x60] ss:$12 sps:$4 sm:$0xff]   ;;  %v1856_v25 = vld [vmem:[#allocation11 + $0x68] ss:$12 sps:$4 sm:$0xff]  }
  0xeb   : > { %1621 = vmatpush3.bf16.msra.mxu1 %v1844_v16  ;;  %v1857_v26 = vld [vmem:[#allocation11 + $0x7c] ss:$12 sps:$4 sm:$0xff]   ;;  %v1859_v27 = vld [vmem:[#allocation11 + $0x78] ss:$12 sps:$4 sm:$0xff]   ;;  %v1860_v28 = vld [vmem:[#allocation11 + $0x80] ss:$12 sps:$4 sm:$0xff]  }
  0xec   : > { %641 = vmatpush1.bf16.msra.mxu0 %v1843_v15  ;;  %1622 = vmatprep.subr.bf16.mxu1 %v2237_v4  ;;  %v1861_v29 = vld [vmem:[#allocation11 + $0x94] ss:$12 sps:$4 sm:$0xff]   ;;  %vm2239_vm0 = vmmov 0   ;;  %v1863_v31 = vld [vmem:[#allocation11 + $0x90] ss:$12 sps:$4 sm:$0xff]   ;;  %v496_v54 = vshrl.u32 %v495_v53, 7 }
  0xed   : > { %642 = vmatprep.subr.bf16.mxu0 %v1845_v17  ;;  %1634 = vmatprep.mubr.msk.bf16.mxu1 %vm2239_vm0, %v2237_v4  ;;  %v1864_v32 = vld [vmem:[#allocation11 + $0x98] ss:$12 sps:$4 sm:$0xff]   ;;  %v1867_v34 = vld [vmem:[#allocation11 + $0xa8] ss:$12 sps:$4 sm:$0xff]   ;;  %v1868_v35 = vld [vmem:[#allocation11 + $0xb0] ss:$12 sps:$4 sm:$0xff]  }
  0xee   : > { %v1865_v33 = vld [vmem:[#allocation11 + $0xac] ss:$12 sps:$4 sm:$0xff]   ;;  %v1533_v44 = vld [vmem:[#allocation8] ss:$0 sm:$0xff]  ;;  %v1534_v48 = vld [vmem:[#allocation9] ss:$0 sm:$0xff] }
  0xef   : > { %1623 = vmatpush3.bf16.msra.mxu1 %v1848_v19  ;;  %v497_v55 = vsub.s32 0, %v496_v54  ;;  %v493_v56 = vld [vmem:[#allocation12] sm:$0x7]  ;;  %v505_v57 = vsub.s32 2, %v496_v54  ;;  %v501_v58 = vsub.s32 1, %v496_v54  ;;  %vm734_vm1 = vcmask 261120  }
  0xf0   : > { %643 = vmatpush1.bf16.msra.mxu0 %v1847_v18  ;;  %1624 = vmatprep.subr.bf16.mxu1 %v2237_v4  ;;  %vm782_vm2 = vcmask 130048   ;;  %s2240_s12 = smov 96   ;;  %s2241_s24 = smov 64   ;;  %vm981_vm3 = vcmask 523520   ;;  %vm1109_vm4 = vcmask 785920   ;;  %vm1237_vm5 = vcmask 1048320  }
  0xf1   : > { %644 = vmatprep.subr.bf16.mxu0 %v1849_v20  ;;  %v498_v59 = vrot.slane %v493_v56, %v497_v55  ;;  %v506_v60 = vrot.slane %v493_v56, %v505_v57  ;;  %v502_v63 = vrot.slane %v493_v56, %v501_v58  ;;  %s2242_s19 = smov 32   ;;  %s415_s10 = scalar_lea.vmem [#allocation17], %s1524_s26 }
  0xf2   : > { %s1370_s25 = sshll.u32 %s415_s10, 4  ;;  %s1583_s15 = sshll.u32 %s2312_s11, 8  ;;  %s2713_s25 = int_to_ptr.vmem [resolvable:$true] %s1370_s25 }
  0xf3   : > { %1625 = vmatpush3.bf16.msra.mxu1 %v1852_v22  ;;  %s2718_s21 = scalar_lea.hbm %s2771_s8, %s1583_s15  ;;  %s1357_s11 = scalar_lea.sflag [#allocation5], %s2564_s16 }
  0xf4   : > { %645 = vmatpush1.bf16.msra.mxu0 %v1851_v21  ;;  %1626 = vmatprep.subr.bf16.mxu1 %v2237_v4  ;;  %v2633_v21 = vld [vmem:[#allocation6] ss:$0 sm:$0xff]  ;;  %s2139_s26 = scalar_lea.vmem %s2713_s25, 256  ;;  %p2792_p13 = scmp.ne.s32.totalorder %s2780_s22, 0 }
  0xf5   : > { %646 = vmatprep.subr.bf16.mxu0 %v1853_v23  ;;  %p2140_p4 = scmp.ne.s32.totalorder %s2713_s25, %s2139_s26  ;;  %s2243_s13 = smov [#allocation17]  }
  0xf6   : > { %s2143_s14 = sshll.u32 %s2243_s13, 4  ;;  %s2144_s14 = int_to_ptr.vmem [resolvable:$false] %s2143_s14 }
  0xf7   : > { %1627 = vmatpush3.bf16.msra.mxu1 %v1856_v25  ;;  %p2141_p1 = pnand %p2140_p4, %p2792_p13  ;;  %p2146_p2 = scmp.lt.s32.totalorder %s2713_s25, %s2144_s14 }
  0xf8   : > { %647 = vmatpush1.bf16.msra.mxu0 %v1855_v24  ;;  %1628 = vmatprep.subr.bf16.mxu1 %v2237_v4 }
  0xf9   : > { %648 = vmatprep.subr.bf16.mxu0 %v1857_v26  ;;  %p2142_p3 = pneg %p2141_p1 }
  0xfb   : > { %1629 = vmatpush3.bf16.msra.mxu1 %v1860_v28 }
  0xfc   : > { %649 = vmatpush1.bf16.msra.mxu0 %v1859_v27  ;;  %1630 = vmatprep.subr.bf16.mxu1 %v2237_v4 }
  0xfd   : > { %650 = vmatprep.subr.bf16.mxu0 %v1861_v29 }
  0xff   : > { %1631 = vmatpush3.bf16.msra.mxu1 %v1864_v32 }
 0x100   : > { %651 = vmatpush1.bf16.msra.mxu0 %v1863_v31  ;;  %1632 = vmatprep.subr.bf16.mxu1 %v2237_v4 }
 0x101   : > { %652 = vmatprep.subr.bf16.mxu0 %v1865_v33 }
 0x103   : > { %1633 = vmatpush3.bf16.msra.mxu1 %v1868_v35 }
 0x104   : > { %653 = vmatpush1.bf16.msra.mxu0 %v1867_v34  ;;  %1638 = vmatprep.subr.bf16.mxu1 %v2237_v4 }
 0x105   : > { %1662 = vmatprep.subr.bf16.mxu0 %v2237_v4 }
 0x173   : > { %v422_v7 = vpop.xlane.xlu0 %421 }
 0x174   : > { %v426_v8 = vmul.f32 0.0078125, %v422_v7 }
 0x176   : > { %v2599_v9 = vsub.f32 %v2590_v0, %v426_v8 }
 0x177   : > { %v424_v10 = vpop.xlane.xlu0 %423 }
 0x178   : > { %v427_v11 = vmul.f32 0.0078125, %v424_v10  ;;  %v430_v12 = vmul.f32 %v2599_v9, %v2599_v9 }
 0x17a   : > { %v2604_v13 = vsub.f32 %v2592_v1, %v427_v11  ;;  %432 = vadd.xlane.f32.xlu1 %v430_v12 }
 0x17c   : > { %v431_v14 = vmul.f32 %v2604_v13, %v2604_v13 }
 0x17e   : > { %434 = vadd.xlane.f32.xlu1 %v431_v14 }
 0x207   : > { %v433_v36 = vpop.xlane.xlu1 %432 }
 0x208   : > { %v436_v37 = vmul.f32 0.0078125, %v433_v36 }
 0x20a   : > { %v438_v38 = vadd.f32 1e-05, %v436_v37 }
 0x20b   : > { %v435_v39 = vpop.xlane.xlu1 %434 }
 0x20c   : > { %1877 = vrsqrt.f32 %v438_v38  ;;  %v437_v40 = vmul.f32 0.0078125, %v435_v39 }
 0x20e   : > { %v439_v41 = vadd.f32 1e-05, %v437_v40 }
 0x210   : > { %1879 = vrsqrt.f32 %v439_v41 }
 0x216   : > { %v1878_v42 = vpop.eup %1877 }
 0x217   : > { %v442_v43 = vmul.f32 %v1878_v42, %v2599_v9 }
 0x219   : > { %v450_v47 = vmul.f32 %v1533_v44, %v442_v43 }
 0x21a   : > { %v1880_v45 = vpop.eup %1879 }
 0x21b   : > { %v443_v46 = vmul.f32 %v1880_v45, %v2604_v13  ;;  %v458_v50 = vadd.f32 %v1534_v48, %v450_v47 }
 0x21d   : > { %v451_v49 = vmul.f32 %v1533_v44, %v443_v46 }
 0x21f   : > { %v459_v51 = vadd.f32 %v1534_v48, %v451_v49 }
 0x221   : > { %v460_v52 = vpack.c.bf16 %v459_v51, %v458_v50 }
 0x223   : > { %671 = vmatmul.mubr.bf16.vlgmr.msra.gmra.mrb[0].mxu0 %v460_v52  ;;  %1635 = vmatmul.mubr.bf16.vlgmr.msra.gmra.mrb[0].mxu1 %v460_v52 }
 0x224   : > { %1640 = vmatprep.mubr.msk.bf16.mxu1 %vm2239_vm0, %v2237_v4  ;;  %1664 = vmatprep.mubr.msk.bf16.mxu0 %vm2239_vm0, %v2237_v4 }
 0x2f6   : > { %v672_v61 = vpop.f32.mrb[0].mxu0  ;;  %v715_v62 = vpop.f32.mrb[0].mxu1 }
 0x2f7   : > { %v673_v2 = vadd.f32 %v672_v61, %v498_v59  ;;  %v674_v3 = vpop.f32.mrb[1].mxu0  ;;  %v1636_v5 = vpop.f32.mrb[1].mxu1  ;;  %v716_v8 = vadd.f32 %v715_v62, %v506_v60 }
 0x2f8   : > { %v676_v6 = vpop.f32.mrb[2].mxu0  ;;  %v718_v7 = vpop.f32.mrb[2].mxu1  ;;  %v675_v13 = vadd.f32 %v674_v3, %v502_v63 }
 0x2f9   : > { %v677_v9 = vadd.f32 %v676_v6, %v498_v59  ;;  %v719_v10 = vadd.f32 %v718_v7, %v506_v60  ;;  %v678_v11 = vpop.f32.mrb[3].mxu0  ;;  %v1637_v12 = vpop.f32.mrb[3].mxu1  ;;  %v723_v15 = vmul.f32 0.17677669, %v673_v2 }
 0x2fa   : > { %v679_v14 = vadd.f32 %v678_v11, %v502_v63 }
 0x2fb   : > { %v724_v16 = vmul.f32 0.17677669, %v677_v9  ;;  %v2624_v17 = vpack.c.bf16 %v719_v10, %v716_v8 }
 0x2fc   : > { %v726_v18 = vpack.c.bf16 %v679_v14, %v675_v13 }
 0x2fd   : > { %v725_v19 = vpack.c.bf16 %v724_v16, %v723_v15 }
 0x2fe   : > { %v739_v20 = vsel %vm734_vm1, %v726_v18, 0 }
 0x2ff   : > { %1639 = vmatpush3.bf16.xpose.msra.mxu1 %v739_v20 }
 0x300   : > { %1644 = vmatprep.subr.bf16.mxu1 %v2237_v4 }
 0x306   : > { %1641 = vmatmul.mubr.msk.bf16.vlgmr.msra.gmra.mrb[4].mxu1 %vm734_vm1, %v725_v19 }
 0x307   : > { %1645 = vmatpush3.bf16.msra.mxu1 %v2624_v17  ;;  %1646 = vmatprep.mubr.msk.bf16.mxu1 %vm2239_vm0, %v2237_v4 }
 0x308   : > { %1650 = vmatprep.subr.bf16.mxu1 %v2237_v4 }
 0x3d9   : > { %v775_v22 = vpop.f32.mrb[4].mxu1 }
 0x3da   : > { %v776_v23 = vadd.f32 %v2633_v21, %v775_v22  ;;  %v1642_v24 = vpop.f32.mrb[5].mxu1 }
 0x3db   : > { %v778_v25 = vpop.f32.mrb[6].mxu1 }
 0x3dc   : > { %v779_v26 = vadd.f32 %v2633_v21, %v778_v25  ;;  %v1643_v27 = vpop.f32.mrb[7].mxu1  ;;  %v783_v28 = vsel %vm782_vm2, %v776_v23, -inf }
 0x3dd   : > { %784 = vmax.xlane.f32.xlu0 %v783_v28 }
 0x3de   : > { %v786_v29 = vsel %vm782_vm2, %v779_v26, -inf }
 0x3df   : > { %787 = vmax.xlane.f32.xlu1 %v786_v29 }
 0x46a   : > { %v785_v30 = vpop.xlane.xlu0 %784 }
 0x46b   : > { %v789_v31 = vsub.f32 %v776_v23, %v785_v30 }
 0x46c   : > { %v788_v32 = vpop.xlane.xlu1 %787 }
 0x46d   : > { %v791_v33 = vmul.f32 1.442695, %v789_v31  ;;  %v790_v34 = vsub.f32 %v779_v26, %v788_v32 }
 0x46f   : > { %1881 = vpow2.f32 %v791_v33  ;;  %v793_v35 = vmul.f32 1.442695, %v790_v34 }
 0x471   : > { %1883 = vpow2.f32 %v793_v35 }
 0x479   : > { %v1882_v36 = vpop.eup %1881 }
 0x47a   : > { %v795_v37 = vsel %vm782_vm2, %v1882_v36, 0.0 }
 0x47b   : > { %v1884_v38 = vpop.eup %1883  ;;  %796 = vadd.xlane.f32.xlu0 %v795_v37 }
 0x47c   : > { %v798_v39 = vsel %vm782_vm2, %v1884_v38, 0.0 }
 0x47d   : > { %799 = vadd.xlane.f32.xlu1 %v798_v39 }
 0x48e   : > { %853 = vrot.lane.b32.xlu1 %v725_v19, %s2240_s12 }
 0x491   : > { %856 = vrot.lane.b32.xlu0 %v726_v18, %s2240_s12 }
 0x492   : > { %985 = vrot.lane.b32.xlu1 %v726_v18, %s2241_s24 }
 0x495   : > { %1113 = vrot.lane.b32.xlu0 %v726_v18, %s2242_s19 }
 0x496   : > { %983 = vrot.lane.b32.xlu1 %v725_v19, %s2241_s24 }
 0x49a   : > { %1111 = vrot.lane.b32.xlu1 %v725_v19, %s2242_s19 }
 0x508   : > { %v797_v40 = vpop.xlane.xlu0 %796 }
 0x509   : > { %1885 = vrcp.f32 %v797_v40 }
 0x50a   : > { %v800_v41 = vpop.xlane.xlu1 %799 }
 0x50b   : > { %1887 = vrcp.f32 %v800_v41 }
 0x50c   : > { %v857_v43 = vpop.permute.xlu0 %856 }
 0x50d   : > { %v862_v52 = vsel %vm734_vm1, %v857_v43, 0 }
 0x50e   : > { %v854_v42 = vpop.permute.xlu1 %853 }
 0x510   : > { %v1114_v50 = vpop.permute.xlu0 %1113 }
 0x511   : > { %v1119_v54 = vsel %vm734_vm1, %v1114_v50, 0 }
 0x512   : > { %v986_v44 = vpop.permute.xlu1 %985 }
 0x513   : > { %v1886_v45 = vpop.eup %1885  ;;  %v991_v46 = vsel %vm734_vm1, %v986_v44, 0 }
 0x514   : > { %1663 = vmatpush3.bf16.xpose.msra.mxu0 %v991_v46  ;;  %v803_v48 = vmul.f32 %v1886_v45, %v1882_v36 }
 0x515   : > { %v1888_v47 = vpop.eup %1887  ;;  %1674 = vmatprep.subr.bf16.mxu0 %v2237_v4 }
 0x516   : > { %v804_v49 = vmul.f32 %v1888_v47, %v1884_v38  ;;  %v984_v53 = vpop.permute.xlu1 %983 }
 0x518   : > { %v805_v51 = vpack.c.bf16 %v804_v49, %v803_v48 }
 0x51a   : > { %1647 = vmatmul.mubr.msk.bf16.vlgmr.msra.gmra.mrb[8].mxu1 %vm782_vm2, %v805_v51  ;;  %v1112_v55 = vpop.permute.xlu1 %1111 }
 0x51b   : > { %1651 = vmatpush3.bf16.xpose.msra.mxu1 %v862_v52  ;;  %1665 = vmatmul.mubr.msk.bf16.vlgmr.msra.gmra.mrb[4].mxu0 %vm734_vm1, %v984_v53 }
 0x51c   : > { %1675 = vmatpush3.bf16.xpose.msra.mxu0 %v1119_v54  ;;  %1652 = vmatprep.mubr.msk.bf16.mxu1 %vm2239_vm0, %v2237_v4 }
 0x51d   : > { %1676 = vmatprep.mubr.msk.bf16.mxu0 %vm2239_vm0, %v2237_v4  ;;  %1656 = vmatprep.subr.bf16.mxu1 %v2237_v4 }
 0x51e   : > { %1686 = vmatprep.subr.bf16.mxu0 %v2237_v4 }
 0x522   : > { %1653 = vmatmul.mubr.msk.bf16.vlgmr.msra.gmra.mrb[12].mxu1 %vm734_vm1, %v854_v42 }
 0x523   : > { %1677 = vmatmul.mubr.msk.bf16.vlgmr.msra.gmra.mrb[8].mxu0 %vm734_vm1, %v1112_v55  ;;  %1658 = vmatprep.mubr.msk.bf16.mxu1 %vm2239_vm0, %v2237_v4 }
 0x524   : > { %1702 = vmatprep.mubr.msk.bf16.mxu0 %vm2239_vm0, %v2237_v4 }
 0x5ed   : > { %v843_v56 = vpop.f32.mrb[8].mxu1 }
 0x5ee   : > { %v1648_v57 = vpop.f32.mrb[9].mxu1  ;;  %v1027_v58 = vpop.f32.mrb[4].mxu0 }
 0x5ef   : > { %v846_v59 = vpop.f32.mrb[10].mxu1  ;;  %v1666_v60 = vpop.f32.mrb[5].mxu0  ;;  %v1028_v10 = vadd.f32 %v2633_v21, %v1027_v58 }
 0x5f0   : > { %v850_v61 = vpack.c.bf16 %v846_v59, %v843_v56  ;;  %v1649_v62 = vpop.f32.mrb[11].mxu1  ;;  %v1030_v63 = vpop.f32.mrb[6].mxu0 }
 0x5f1   : > { %v1667_v2 = vpop.f32.mrb[7].mxu0  ;;  %v1031_v19 = vadd.f32 %v2633_v21, %v1030_v63  ;;  %v1034_v20 = vsel %vm782_vm2, %v1028_v10, -inf }
 0x5f2   : > { %851 = vst.msk [vmem:[#allocation2] sm:$0xff] %vm734_vm1, %v850_v61 }
 0x5f3   : > { %v1037_v24 = vsel %vm782_vm2, %v1031_v19, -inf }
 0x5f5   : > { %v898_v3 = vpop.f32.mrb[12].mxu1 }
 0x5f6   : > { %v899_v5 = vadd.f32 %v2633_v21, %v898_v3  ;;  %v1654_v6 = vpop.f32.mrb[13].mxu1  ;;  %v1155_v7 = vpop.f32.mrb[8].mxu0 }
 0x5f7   : > { %v901_v8 = vpop.f32.mrb[14].mxu1  ;;  %v1678_v9 = vpop.f32.mrb[9].mxu0  ;;  %v1156_v23 = vadd.f32 %v2633_v21, %v1155_v7 }
 0x5f8   : > { %v902_v11 = vadd.f32 %v2633_v21, %v901_v8  ;;  %v1655_v12 = vpop.f32.mrb[15].mxu1  ;;  %v1158_v13 = vpop.f32.mrb[10].mxu0  ;;  %v905_v14 = vsel %vm782_vm2, %v899_v5, -inf }
 0x5f9   : > { %v1679_v15 = vpop.f32.mrb[11].mxu0  ;;  %906 = vmax.xlane.f32.xlu0 %v905_v14  ;;  %v1159_v16 = vadd.f32 %v2633_v21, %v1158_v13  ;;  %v1162_v25 = vsel %vm782_vm2, %v1156_v23, -inf }
 0x5fa   : > { %v908_v18 = vsel %vm782_vm2, %v902_v11, -inf }
 0x5fb   : > { %909 = vmax.xlane.f32.xlu1 %v908_v18  ;;  %v1165_v22 = vsel %vm782_vm2, %v1159_v16, -inf  ;;  %v1869_v18 = vld [vmem:[#allocation14] sm:$0xff]  }
 0x5fc   : > { %1687 = vmatpush3.bf16.msra.mxu0 %v1869_v18 }
 0x5fd   : > { %1035 = vmax.xlane.f32.xlu0 %v1034_v20  ;;  %1688 = vmatprep.subr.bf16.mxu0 %v2237_v4  ;;  %v1871_v20 = vld [vmem:[#allocation14 + $0x10] sm:$0xff]  }
 0x5ff   : > { %1166 = vmax.xlane.f32.xlu1 %v1165_v22  ;;  %v1872_v22 = vld [vmem:[#allocation14 + $0x18] sm:$0xff]  }
 0x601   : > { %1038 = vmax.xlane.f32.xlu0 %v1037_v24  ;;  %v1873_v24 = vld [vmem:[#allocation14 + $0x20] sm:$0xff]  }
 0x605   : > { %1163 = vmax.xlane.f32.xlu0 %v1162_v25 }
 0x686   : > { %v907_v26 = vpop.xlane.xlu0 %906 }
 0x687   : > { %v911_v35 = vsub.f32 %v899_v5, %v907_v26 }
 0x688   : > { %v910_v27 = vpop.xlane.xlu1 %909 }
 0x689   : > { %v912_v36 = vsub.f32 %v902_v11, %v910_v27  ;;  %v913_v40 = vmul.f32 1.442695, %v911_v35  ;;  %v1874_v27 = vld [vmem:[#allocation14 + $0x28] sm:$0xff]  }
 0x68a   : > { %v1036_v28 = vpop.xlane.xlu0 %1035 }
 0x68b   : > { %v1040_v29 = vsub.f32 %v1028_v10, %v1036_v28  ;;  %v915_v41 = vmul.f32 1.442695, %v912_v36 }
 0x68c   : > { %v1167_v30 = vpop.xlane.xlu1 %1166 }
 0x68d   : > { %v1042_v31 = vmul.f32 1.442695, %v1040_v29  ;;  %v1169_v32 = vsub.f32 %v1159_v16, %v1167_v30 }
 0x68e   : > { %v1039_v33 = vpop.xlane.xlu0 %1038 }
 0x68f   : > { %1889 = vpow2.f32 %v1042_v31  ;;  %v1041_v34 = vsub.f32 %v1031_v19, %v1039_v33  ;;  %v1172_v37 = vmul.f32 1.442695, %v1169_v32  ;;  %v1870_v19 = vld [vmem:[#allocation14 + $0x8] sm:$0xff]   ;;  %v1875_v31 = vld [vmem:[#allocation14 + $0x30] sm:$0xff]  }
 0x690   : > { %1689 = vmatpush3.bf16.msra.mxu0 %v1870_v19 }
 0x691   : > { %v1044_v21 = vmul.f32 1.442695, %v1041_v34  ;;  %1690 = vmatprep.subr.bf16.mxu0 %v2237_v4  ;;  %v1876_v34 = vld [vmem:[#allocation14 + $0x38] sm:$0xff]  }
 0x692   : > { %v1164_v38 = vpop.xlane.xlu0 %1163 }
 0x693   : > { %1891 = vpow2.f32 %v1044_v21  ;;  %v1168_v39 = vsub.f32 %v1156_v23, %v1164_v38 }
 0x694   : > { %1893 = vpow2.f32 %v1172_v37  ;;  %1691 = vmatpush3.bf16.msra.mxu0 %v1871_v20 }
 0x695   : > { %v1170_v42 = vmul.f32 1.442695, %v1168_v39  ;;  %1692 = vmatprep.subr.bf16.mxu0 %v2237_v4 }
 0x697   : > { %1895 = vpow2.f32 %v1170_v42 }
 0x698   : > { %1897 = vpow2.f32 %v913_v40  ;;  %1693 = vmatpush3.bf16.msra.mxu0 %v1872_v22 }
 0x699   : > { %v1890_v43 = vpop.eup %1889  ;;  %1899 = vpow2.f32 %v915_v41  ;;  %1694 = vmatprep.subr.bf16.mxu0 %v2237_v4 }
 0x69a   : > { %v1046_v44 = vsel %vm782_vm2, %v1890_v43, 0.0 }
 0x69b   : > { %1047 = vadd.xlane.f32.xlu0 %v1046_v44  ;;  %v1568_v44 = vld [vmem:[#allocation15] ss:$0 sm:$0xff] }
 0x69c   : > { %1695 = vmatpush3.bf16.msra.mxu0 %v1873_v24 }
 0x69d   : > { %v1892_v45 = vpop.eup %1891  ;;  %1696 = vmatprep.subr.bf16.mxu0 %v2237_v4 }
 0x69e   : > { %v1049_v46 = vsel %vm782_vm2, %v1892_v45, 0.0  ;;  %v1894_v47 = vpop.eup %1893 }
 0x69f   : > { %1050 = vadd.xlane.f32.xlu1 %v1049_v46  ;;  %v1177_v51 = vsel %vm782_vm2, %v1894_v47, 0.0 }
 0x6a0   : > { %1697 = vmatpush3.bf16.msra.mxu0 %v1874_v27 }
 0x6a1   : > { %v1896_v48 = vpop.eup %1895  ;;  %1698 = vmatprep.subr.bf16.mxu0 %v2237_v4 }
 0x6a2   : > { %v1898_v49 = vpop.eup %1897  ;;  %v1174_v50 = vsel %vm782_vm2, %v1896_v48, 0.0 }
 0x6a3   : > { %v1900_v52 = vpop.eup %1899  ;;  %1175 = vadd.xlane.f32.xlu0 %v1174_v50  ;;  %1178 = vadd.xlane.f32.xlu1 %v1177_v51  ;;  %v917_v53 = vsel %vm782_vm2, %v1898_v49, 0.0 }
 0x6a4   : > { %v920_v54 = vsel %vm782_vm2, %v1900_v52, 0.0  ;;  %1699 = vmatpush3.bf16.msra.mxu0 %v1875_v31 }
 0x6a5   : > { %1700 = vmatprep.subr.bf16.mxu0 %v2237_v4 }
 0x6a7   : > { %918 = vadd.xlane.f32.xlu0 %v917_v53  ;;  %921 = vadd.xlane.f32.xlu1 %v920_v54 }
 0x6a8   : > { %1701 = vmatpush3.bf16.msra.mxu0 %v1876_v34 }
 0x6b8   : > { %1057 = vrot.lane.b32.xlu1 %v2624_v17, %s2241_s24 }
 0x6bc   : > { %1185 = vrot.lane.b32.xlu1 %v2624_v17, %s2242_s19 }
 0x6bd   : > { %929 = vrot.lane.b32.xlu0 %v2624_v17, %s2240_s12 }
 0x728   : > { %v1048_v55 = vpop.xlane.xlu0 %1047 }
 0x72c   : > { %v1051_v56 = vpop.xlane.xlu1 %1050 }
 0x730   : > { %v1176_v57 = vpop.xlane.xlu0 %1175  ;;  %v1179_v58 = vpop.xlane.xlu1 %1178 }
 0x734   : > { %v919_v59 = vpop.xlane.xlu0 %918  ;;  %v922_v60 = vpop.xlane.xlu1 %921 }
 0x735   : > { %1901 = vrcp.f32 %v919_v59 }
 0x736   : > { %1903 = vrcp.f32 %v922_v60 }
 0x737   : > { %1905 = vrcp.f32 %v1051_v56 }
 0x738   : > { %v930_v61 = vpop.permute.xlu0 %929  ;;  %1907 = vrcp.f32 %v1048_v55  ;;  %v1058_v6 = vpop.permute.xlu1 %1057 }
 0x739   : > { %1657 = vmatpush3.bf16.msra.mxu1 %v930_v61  ;;  %1909 = vrcp.f32 %v1176_v57 }
 0x73a   : > { %1668 = vmatprep.subr.bf16.mxu1 %v2237_v4  ;;  %1911 = vrcp.f32 %v1179_v58 }
 0x73c   : > { %v1186_v13 = vpop.permute.xlu1 %1185 }
 0x73f   : > { %v1902_v62 = vpop.eup %1901 }
 0x740   : > { %v1904_v63 = vpop.eup %1903  ;;  %v925_v2 = vmul.f32 %v1902_v62, %v1898_v49 }
 0x741   : > { %v926_v3 = vmul.f32 %v1904_v63, %v1900_v52  ;;  %v1906_v5 = vpop.eup %1905 }
 0x742   : > { %v1908_v7 = vpop.eup %1907  ;;  %v1055_v8 = vmul.f32 %v1906_v5, %v1892_v45 }
 0x743   : > { %v927_v17 = vpack.c.bf16 %v926_v3, %v925_v2  ;;  %v1054_v9 = vmul.f32 %v1908_v7, %v1890_v43  ;;  %v1910_v10 = vpop.eup %1909 }
 0x744   : > { %v1912_v12 = vpop.eup %1911  ;;  %v1182_v14 = vmul.f32 %v1910_v10, %v1896_v48 }
 0x745   : > { %1659 = vmatmul.mubr.msk.bf16.vlgmr.msra.gmra.mrb[16].mxu1 %vm782_vm2, %v927_v17  ;;  %v1056_v11 = vpack.c.bf16 %v1055_v8, %v1054_v9  ;;  %v1183_v15 = vmul.f32 %v1912_v12, %v1894_v47 }
 0x746   : > { %1669 = vmatpush3.bf16.msra.mxu1 %v1058_v6  ;;  %1670 = vmatprep.mubr.msk.bf16.mxu1 %vm2239_vm0, %v2237_v4 }
 0x747   : > { %1680 = vmatprep.subr.bf16.mxu1 %v2237_v4  ;;  %v1184_v16 = vpack.c.bf16 %v1183_v15, %v1182_v14 }
 0x74d   : > { %1671 = vmatmul.mubr.msk.bf16.vlgmr.msra.gmra.mrb[20].mxu1 %vm782_vm2, %v1056_v11 }
 0x74e   : > { %1681 = vmatpush3.bf16.msra.mxu1 %v1186_v13  ;;  %1682 = vmatprep.mubr.msk.bf16.mxu1 %vm2239_vm0, %v2237_v4 }
 0x755   : > { %1683 = vmatmul.mubr.msk.bf16.vlgmr.msra.gmra.mrb[24].mxu1 %vm782_vm2, %v1184_v16 }
 0x818   : > { %v969_v23 = vpop.f32.mrb[16].mxu1 }
 0x819   : > { %v1660_v25 = vpop.f32.mrb[17].mxu1 }
 0x81a   : > { %v972_v26 = vpop.f32.mrb[18].mxu1 }
 0x81b   : > { %v976_v28 = vpack.c.bf16 %v972_v26, %v969_v23  ;;  %v1661_v29 = vpop.f32.mrb[19].mxu1 }
 0x81d   : > { %978 = vrot.lane.b32.xlu1 %v976_v28, %s2242_s19 }
 0x820   : > { %v1097_v30 = vpop.f32.mrb[20].mxu1 }
 0x821   : > { %v1672_v32 = vpop.f32.mrb[21].mxu1 }
 0x822   : > { %v1100_v33 = vpop.f32.mrb[22].mxu1 }
 0x823   : > { %v1104_v35 = vpack.c.bf16 %v1100_v33, %v1097_v30  ;;  %v1673_v36 = vpop.f32.mrb[23].mxu1 }
 0x825   : > { %1106 = vrot.lane.b32.xlu0 %v1104_v35, %s2241_s24 }
 0x828   : > { %v1225_v37 = vpop.f32.mrb[24].mxu1 }
 0x829   : > { %v1684_v21 = vpop.f32.mrb[25].mxu1 }
 0x82a   : > { %v1228_v38 = vpop.f32.mrb[26].mxu1 }
 0x82b   : > { %v1232_v39 = vpack.c.bf16 %v1228_v38, %v1225_v37  ;;  %v1685_v40 = vpop.f32.mrb[27].mxu1 }
 0x82d   : > { %1234 = vrot.lane.b32.xlu1 %v1232_v39, %s2240_s12  ;;  %s2145_s12 = scalar_lea.vmem %s2144_s14, 512 }
 0x82e   : > { %p2147_p8 = scmp.lt.s32.totalorder %s2145_s12, %s2139_s26 }
 0x830   : > { %p2148_p6 = por %p2147_p8, %p2146_p2 }
 0x832   : > { %p2149_p11 = pnand %p2148_p6, %p2142_p3 }
 0x88f   : > { %v979_v41 = vpop.permute.xlu1 %978 }
 0x890   : > { %982 = vst.msk [vmem:[#allocation2] sm:$0xff] %vm981_vm3, %v979_v41 }
 0x897   : > { %v1107_v42 = vpop.permute.xlu0 %1106 }
 0x898   : > { %1110 = vst.msk [vmem:[#allocation2] sm:$0xff] %vm1109_vm4, %v1107_v42 }
 0x89f   : > { %v1235_v4 = vpop.permute.xlu1 %1234 }
 0x8a0   : > { %1238 = vst.msk [vmem:[#allocation2] sm:$0xff] %vm1237_vm5, %v1235_v4 }
 0x8a7   : > { %v1239_v43 = vld [vmem:[#allocation2] sm:$0xff] }
 0x8a8   : > { %1703 = vmatmul.mubr.bf16.vlgmr.msra.gmra.mrb[12].mxu0 %v1239_v43 }
 0x97b   : > { %v1345_v45 = vpop.f32.mrb[12].mxu0 }
 0x97c   : > { %v1346_v46 = vadd.f32 %v1568_v44, %v1345_v45  ;;  %v1704_v47 = vpop.f32.mrb[13].mxu0 }
 0x97d   : > { %v1348_v48 = vpop.f32.mrb[14].mxu0 }
 0x97e   : > { %v1352_v49 = vadd.f32 %v1346_v46, %v2590_v0  ;;  %v1349_v50 = vadd.f32 %v1568_v44, %v1348_v48  ;;  %v1705_v51 = vpop.f32.mrb[15].mxu0 }
 0x980   : > { %1354 = vst [vmem:[%s415_s10] sm:$0xff] %v1352_v49  ;;  %v1353_v52 = vadd.f32 %v1349_v50, %v2592_v1 }
 0x982   : > { %1355 = vst [vmem:[%s415_s10 + $0x8] sm:$0xff] %v1353_v52 }
 0x983   : > { %2152 = shalt.err (!%p2149_p11)
}
 0x984   : > { %s2153_s24 = scalar_lea.hbm %s2718_s21, 256  ;;  %s2157_s15 = scalar_lea.hbm %s2771_s8, 512 }
 0x985   : > { %p2154_p12 = scmp.ne.s32.totalorder %s2718_s21, %s2153_s24  ;;  %p2158_p9 = scmp.lt.u32.totalorder %s2718_s21, %s2771_s8 }
 0x986   : > { %p2159_p7 = scmp.lt.u32.totalorder %s2157_s15, %s2153_s24  ;;  %p2161_p4 = scmp.lt.u32.totalorder %s2153_s24, %s2718_s21 }
 0x987   : > { %p2155_p0 = pnand %p2154_p12, %p2792_p13 }
 0x988   : > { %p2160_p10 = por %p2159_p7, %p2158_p9 }
 0x989   : > { %p2156_p5 = pneg %p2155_p0 }
 0x98a   : > { %p2162_p1 = por %p2161_p4, %p2160_p10 }
 0x98c   : > { %p2163_p3 = pnand %p2162_p1, %p2156_p5 }
 0x98e   : > { %2166 = shalt.err (!%p2163_p3)
}
 0x98f   : > { %s2244_s26 = smov 128   ;;  %s2245_s13 = smov 8  }
 0x990   : > { %1736 = dma.vmem_to_hbm [thread:$0]  (%p2792_p13), %s2713_s25, 256, %s2718_s21, %s1357_s11, %s2244_s26, %s2244_s26, %s2245_s13  }
 0x991 PF: > { %s1385_s14 = sand.u32 1, %s2209_s27   ;;  %p2793_p2 = scmp.ne.s32.totalorder %s2781_s9, 0 }
 0x992   : > { %p2794_p8 = scmp.ge.s32.totalorder %s2221_s30, 2  ;;  %s1386_s12 = scalar_lea.sflag [#allocation5], %s1385_s14 }
 0x994   : > { %p1765_p6 = pnand %p2794_p8, %p2793_p2 }
 0x996   : > { %2204 = dma.done.wait (!%p1765_p6), %s1386_s12, 256  }
 0x997   : > { %2206 = vsyncadd (!%p1765_p6), %s1386_s12, 4294967040  ;;  %p25_p11 = scmp.ge.s32.totalorder %s2491_s17, 4   ;;  %s2795_s27 = smov %s2213_s28 }
 0x998   : > { %s2796_s28 = smov %s2217_s29  ;;  %s2797_s29 = smov %s2503_s23 }
 0x999   : > { %s2798_s30 = smov %s2491_s17  ;;  %27 = sbr.rel (!%p25_p11) target bundleno = 9 (0x9), region = 125 }
 0x9a0   :  { %1391 = vsyncpa [#allocation4], 1 }
 0x9a1   :  { %1393 = vsyncpa [#allocation4 + $0x1], 1 }
 0x9a2   :  { %1394 = vsyncpa [#allocation7], 1 }
 0x9a3   :  { %1395 = vsyncpa [#allocation10], 1 }
 0x9a4   :  { %1396 = vsyncpa [#allocation13], 1 }
 0x9a5   :  { %1397 = vsyncpa [#allocation16], 1 }
 0x9a6   :  { %1398 = vsyncpa [#allocation5], 1 }
 0x9a7   :  { %1400 = vsyncpa [#allocation5 + $0x1], 1 }

</bundles_post_ra>
